<compile_context>
chip_gen: v7x
topology: tpu7x:2x2x1
jax: 0.10.0
libtpu: 0.0.40
codegen_flags: <defaults>
</compile_context>

<pallas_src>
import math
from functools import partial

import jax
import jax.numpy as jnp
import numpy as np
from jax.experimental import pallas as pl
from jax.experimental.pallas import tpu as pltpu


def _attention_kernel(*refs, n_head, q_len, has_mask):
    """One batch block: fused projections + per-head masked-softmax attention."""
    if has_mask:
        (x_ref, bias_ref, wv_ref, bv_ref, wqk_ref, bqk_ref, wp_ref, bp_ref,
         out_ref) = refs
    else:
        (x_ref, wv_ref, bv_ref, wqk_ref, bqk_ref, wp_ref, bp_ref, out_ref) = refs
        bias_ref = None

    Bb, T, E = out_ref.shape
    H = n_head
    HE = wv_ref.shape[1]                        # n_head * n_embd
    f32 = jnp.float32
    cdt = x_ref.dtype                           # bf16 MXU-input dtype

    x_pad = x_ref[...]                          # (Bb, T + q_len - 1, E)

    # Additive mask bias: generated on the fly for the default causal mask (no (T,T)
    # f32 input streamed/resident), shipped as an input for explicit (log-sparse) masks.
    if has_mask:
        bias = bias_ref[...]                    # (T, T) f32
    else:
        row = jax.lax.broadcasted_iota(jnp.int32, (T, T), 0)
        col = jax.lax.broadcasted_iota(jnp.int32, (T, T), 1)
        bias = jnp.where(col <= row, 0.0, -1e9).astype(f32)

    # Causal-conv input, unfolded once per block: x_unf[b, t, j*E + c] = x_pad[b, t+j, c].
    x = x_pad[:, q_len - 1:q_len - 1 + T, :]                      # unshifted x, (Bb, T, E)
    x_unf = jnp.concatenate([x_pad[:, j:j + T, :] for j in range(q_len)], axis=-1)

    # Fused, lane-dense projections (heads & conv taps folded into the weight columns).
    qk = jnp.einsum('btc,co->bto', x_unf, wqk_ref[...],
                    preferred_element_type=f32) + bqk_ref[...]    # (Bb, T, 2*H*E)
    v_all = jnp.einsum('bte,ef->btf', x, wv_ref[...],
                       preferred_element_type=f32) + bv_ref[...]  # (Bb, T, H*E)
    q_all = qk[:, :, :HE].astype(cdt)           # 1/sqrt(E) already folded into Wq/bq
    k_all = qk[:, :, HE:].astype(cdt)
    v_all = v_all.astype(cdt)

    # Per-head scores / softmax / PV (contraction dim is E, inherently per head).
    # TODO(synk): for large n_head move this loop onto a grid axis (projections cached in
    # VMEM scratch at h==0) to bound vreg live ranges; H is small and static here, so a
    # fully unrolled loop is cheaper than dynamic lane-offset slicing.
    outs = []
    for h in range(H):
        sl = slice(h * E, (h + 1) * E)
        q_h, k_h, v_h = q_all[:, :, sl], k_all[:, :, sl], v_all[:, :, sl]
        s = jnp.einsum('bte,bse->bts', q_h, k_h,
                       preferred_element_type=f32) + bias
        m = jnp.max(s, axis=-1, keepdims=True)
        p = jnp.exp(s - m)
        p = p * pl.reciprocal(jnp.sum(p, axis=-1, keepdims=True), approx=True)
        o_h = jnp.einsum('bts,bse->bte', p.astype(cdt), v_h,
                         preferred_element_type=f32)
        outs.append(o_h.astype(cdt))

    # merge_heads == lane concat; c_proj as one (Bb*T, H*E) @ (H*E, E) matmul.
    o_all = jnp.concatenate(outs, axis=-1)                        # (Bb, T, H*E)
    out = jnp.einsum('btf,fe->bte', o_all, wp_ref[...],
                     preferred_element_type=f32) + bp_ref[...]
    out_ref[...] = out.astype(out_ref.dtype)


def _per_batch_vmem_bytes(T, E, H, q_len):
    """Conservative per-batch-element VMEM footprint of one grid step (bytes)."""
    HE = H * E
    Tp = T + q_len - 1
    b = 0
    b += 2 * Tp * E * 2            # streamed x block, bf16, double-buffered
    b += 2 * T * E * 4             # output block, f32, double-buffered
    b += T * q_len * E * 2         # unfolded conv input, bf16
    b += T * 2 * HE * (4 + 2)      # qk f32 + bf16 q/k copies
    b += T * HE * (4 + 2)          # value f32 + bf16
    b += 3 * T * T * 4             # live per-head scores / probs (overlap headroom)
    b += 2 * T * HE * 2            # per-head outputs + merged heads, bf16
    b += T * E * 4                 # c_proj result, f32
    return b


def _pick_b_blk_and_vmem(B, T, E, H, q_len, const_bytes, requested):
    """Derive the batch block from a VMEM budget; return (b_blk, vmem_limit_bytes)."""
    try:
        vmem_cap = int(pltpu.get_tpu_info().vmem_capacity_bytes)
    except Exception:
        vmem_cap = 64 * 1024 * 1024            # assume smallest (v7x-like) when unknown
    vmem_limit = min(vmem_cap * 3 // 4, 112 * 1024 * 1024)

    if requested is not None:
        assert B % requested == 0, "b_blk must divide batch"
        return requested, vmem_limit

    per_batch = _per_batch_vmem_bytes(T, E, H, q_len)
    budget = max(per_batch, vmem_limit // 2 - 2 * const_bytes)
    b_cap = max(1, budget // per_batch)

    # v7x (64 MiB VMEM) has two TensorCores -> keep >= 2 grid steps so both stay busy;
    # v5e/v6e (128 MiB, single core) prefer one fat step (per-step overhead ~0.35 us).
    min_steps = 2 if (vmem_cap < 100 * 1024 * 1024 and B >= 2) else 1
    target = int(min(b_cap, max(1, B // min_steps)))
    for d in range(target, 0, -1):
        if B % d == 0:
            return d, vmem_limit
    return 1, vmem_limit


def attention_pallas(x, params, *, n_head, n_embd, q_len, scale, mask=None, b_blk=None):
    """x: (B, T, n_embd) f32 -> (B, T, n_embd) f32 (eval-mode forward of Attention)."""
    B, T, E = x.shape
    assert E == n_embd
    H = n_head
    HE = H * E
    f32 = jnp.float32
    cdt = jnp.bfloat16                                            # MXU input dtype

    wv, bv, w_conv, bqk, wp, bp = params

    # ---- fused weight layouts (heads & conv taps folded into output columns) ----
    wv_m = wv.astype(cdt)                                         # (E, H*E)
    bv_m = bv.reshape(1, HE).astype(f32)
    # nn.Conv1d weight (2*H*E, E, q_len) -> (q_len*E, 2*H*E): W[j*E + c, o] = w_conv[o, c, j]
    wqk_m = jnp.transpose(w_conv, (2, 1, 0)).reshape(q_len * E, 2 * HE).astype(f32)
    bqk_m = bqk.reshape(1, 2 * HE).astype(f32)
    if scale:                                                     # fold 1/sqrt(E) into q side
        sc = jnp.concatenate([jnp.full((HE,), 1.0 / math.sqrt(E), f32),
                              jnp.ones((HE,), f32)])
        wqk_m = wqk_m * sc[None, :]
        bqk_m = bqk_m * sc[None, :]
    wqk_m = wqk_m.astype(cdt)
    wp_m = wp.astype(cdt)                                         # (H*E, E)
    bp_m = bp.reshape(1, E).astype(f32)

    # explicit (e.g. log-sparse) mask -> additive bias input; None -> causal built in-kernel
    if mask is not None:
        m2 = jnp.asarray(mask, f32)
        m2 = m2.reshape(m2.shape[-2], m2.shape[-1])[:T, :T]
        attn_bias = (m2 - 1.0) * 1e9                              # (T, T)
    else:
        attn_bias = None

    consts = [wv_m, bv_m, wqk_m, bqk_m, wp_m, bp_m]
    if attn_bias is not None:
        consts.append(attn_bias)
    const_bytes = int(sum(int(a.size) * a.dtype.itemsize for a in consts))

    b_blk, vmem_limit = _pick_b_blk_and_vmem(B, T, E, H, q_len, const_bytes, b_blk)
    grid_b = B // b_blk

    # left-pad time by q_len-1 so the conv taps are static slices of the resident tile
    x_pad = jnp.pad(x, ((0, 0), (q_len - 1, 0), (0, 0))).astype(cdt)   # (B, T+q_len-1, E)
    Tp = T + q_len - 1

    kernel = partial(_attention_kernel, n_head=H, q_len=q_len,
                     has_mask=attn_bias is not None)

    def _call(single_buffer_consts):
        def const_spec(a):
            kw = dict(pipeline_mode=pl.Buffered(1)) if single_buffer_consts else {}
            return pl.BlockSpec(a.shape, lambda b: (0,) * a.ndim, **kw)

        in_specs = [pl.BlockSpec((b_blk, Tp, E), lambda b: (b, 0, 0))]   # streamed x
        operands = [x_pad]
        if attn_bias is not None:
            in_specs.append(const_spec(attn_bias))
            operands.append(attn_bias)
        for a in (wv_m, bv_m, wqk_m, bqk_m, wp_m, bp_m):
            in_specs.append(const_spec(a))
            operands.append(a)

        return pl.pallas_call(
            kernel,
            out_shape=jax.ShapeDtypeStruct((B, T, E), jnp.float32),
            grid=(grid_b,),
            in_specs=in_specs,
            out_specs=pl.BlockSpec((b_blk, T, E), lambda b: (b, 0, 0)),
            compiler_params=pltpu.CompilerParams(
                dimension_semantics=("parallel",),
                vmem_limit_bytes=int(vmem_limit)),
        )(*operands)

    try:
        # grid-invariant weights/bias/mask: single-buffer to halve their VMEM footprint
        return _call(True)
    except Exception:
        # fall back to default double-buffering if pipeline_mode / Buffered(1) is unsupported
        return _call(False)


def attention_reference(x, params, *, n_head, n_embd, q_len, scale, mask):
    """Pure-JAX f32 mirror of the PyTorch forward (eval mode), for verification."""
    B, T, E = x.shape
    H = n_head
    wv, bv, w_conv, bqk, wp, bp = params

    value = x @ wv + bv                                            # (B, T, H*E)

    xpad = jnp.pad(x, ((0, 0), (q_len - 1, 0), (0, 0)))
    xunf = jnp.stack([xpad[:, t:t + T, :] for t in range(q_len)], axis=-1)  # (B,T,E,q_len)
    qk = jnp.einsum('btck,ock->bto', xunf, w_conv) + bqk           # (B, T, 2*H*E)
    query, key = qk[..., :H * E], qk[..., H * E:]

    def split_heads(t):
        return t.reshape(B, T, H, E).transpose(0, 2, 1, 3)         # (B, H, T, E)

    q, k, v = split_heads(query), split_heads(key), split_heads(value)
    s = jnp.einsum('bhtd,bhsd->bhts', q, k)
    if scale:
        s = s / math.sqrt(E)
    s = s * mask + (-1e9) * (1.0 - mask)
    p = jax.nn.softmax(s, axis=-1)
    o = jnp.einsum('bhts,bhsd->bhtd', p, v)
    merged = o.transpose(0, 2, 1, 3).reshape(B, T, H * E)
    return merged @ wp + bp


def init_params(key, *, n_head, n_embd, q_len):
    """Deterministic synthetic parameters in the module's native shapes."""
    H, E = n_head, n_embd
    k1, k2, k3, k4 = jax.random.split(key, 4)
    wv = 0.02 * jax.random.normal(k1, (E, H * E), jnp.float32)          # Conv1D value
    bv = jnp.zeros((H * E,), jnp.float32)
    w_conv = 0.02 * jax.random.normal(k2, (2 * H * E, E, q_len), jnp.float32)  # nn.Conv1d
    bqk = 0.02 * jax.random.normal(k3, (2 * H * E,), jnp.float32)
    wp = 0.02 * jax.random.normal(k4, (H * E, E), jnp.float32)          # Conv1D c_proj
    bp = jnp.zeros((E,), jnp.float32)
    return (wv, bv, w_conv, bqk, wp, bp)


if __name__ == "__main__":
    # small, module-consistent shapes
    B, T = 2, 16            # batch, sequence length (== win_len)
    n_head, n_embd = 4, 32
    q_len = 3
    scale = True

    key = jax.random.PRNGKey(0)
    kx, kp = jax.random.split(key)
    x = jax.random.normal(kx, (B, T, n_embd), jnp.float32)
    params = init_params(kp, n_head=n_head, n_embd=n_embd, q_len=q_len)

    causal = jnp.tril(jnp.ones((T, T), jnp.float32))

    # Path 1: module default (sparse=None) -> causal mask, generated inside the kernel.
    out = attention_pallas(x, params, n_head=n_head, n_embd=n_embd,
                           q_len=q_len, scale=scale, mask=None)
    out = jax.block_until_ready(out)
    ref = attention_reference(x, params, n_head=n_head, n_embd=n_embd,
                              q_len=q_len, scale=scale, mask=causal)
    # bf16 MXU inputs + approx reciprocal -> slightly relaxed tolerance vs f32 reference
    np.testing.assert_allclose(np.asarray(out), np.asarray(ref), atol=2e-3, rtol=2e-3)

    # Path 2: explicit 0/1 mask (stand-in for the log-sparse mask) shipped as a bias.
    idx = jnp.arange(T)
    local = ((idx[:, None] - idx[None, :] >= 0) &
             (idx[:, None] - idx[None, :] < 5)).astype(jnp.float32)
    out2 = attention_pallas(x, params, n_head=n_head, n_embd=n_embd,
                            q_len=q_len, scale=scale, mask=local)
    out2 = jax.block_until_ready(out2)
    ref2 = attention_reference(x, params, n_head=n_head, n_embd=n_embd,
                               q_len=q_len, scale=scale, mask=local)
    np.testing.assert_allclose(np.asarray(out2), np.asarray(ref2), atol=2e-3, rtol=2e-3)

    print("KERNEL_OK")
</pallas_src>

<mosaic_0001>
module attributes {stable_mosaic.version = 11 : i64} {
  func.func @_attention_kernel(%arg0: i32, %arg1: memref<1x18x32xbf16, #tpu.memory_space<vmem>>, %arg2: memref<32x128xbf16, #tpu.memory_space<vmem>>, %arg3: memref<1x128xf32, #tpu.memory_space<vmem>>, %arg4: memref<96x256xbf16, #tpu.memory_space<vmem>>, %arg5: memref<1x256xf32, #tpu.memory_space<vmem>>, %arg6: memref<128x32xbf16, #tpu.memory_space<vmem>>, %arg7: memref<1x32xf32, #tpu.memory_space<vmem>>, %arg8: memref<1x16x32xf32, #tpu.memory_space<vmem>>) attributes {dimension_semantics = [#tpu.dimension_semantics<parallel>], iteration_bounds = array<i64: 2>, scalar_prefetch = 0 : i64, scratch_operands = 0 : i64, tpu.core_type = #tpu.core_type<tc>, window_params = [{transform_indices = @transform_0, window_bounds = array<i64: 1, 18, 32>}, {pipeline_mode = #tpu.pipeline_mode<synchronous>, transform_indices = @transform_1, window_bounds = array<i64: 32, 128>}, {pipeline_mode = #tpu.pipeline_mode<synchronous>, transform_indices = @transform_2, window_bounds = array<i64: 1, 128>}, {pipeline_mode = #tpu.pipeline_mode<synchronous>, transform_indices = @transform_3, window_bounds = array<i64: 96, 256>}, {pipeline_mode = #tpu.pipeline_mode<synchronous>, transform_indices = @transform_4, window_bounds = array<i64: 1, 256>}, {pipeline_mode = #tpu.pipeline_mode<synchronous>, transform_indices = @transform_5, window_bounds = array<i64: 128, 32>}, {pipeline_mode = #tpu.pipeline_mode<synchronous>, transform_indices = @transform_6, window_bounds = array<i64: 1, 32>}, {transform_indices = @transform_7, window_bounds = array<i64: 1, 16, 32>}]} {
    %c0 = arith.constant 0 : index
    %c0_0 = arith.constant 0 : index
    %c0_1 = arith.constant 0 : index
    %0 = vector.load %arg1[%c0, %c0_0, %c0_1] : memref<1x18x32xbf16, #tpu.memory_space<vmem>>, vector<1x18x32xbf16>
    %1 = tpu.iota {dimensions = array<i32: 0>} : vector<16x16xi32>
    %2 = tpu.iota {dimensions = array<i32: 1>} : vector<16x16xi32>
    %3 = arith.cmpi sle, %2, %1 : vector<16x16xi32>
    %cst = arith.constant 0.000000e+00 : f32
    %cst_2 = arith.constant -1.000000e+09 : f32
    %4 = vector.broadcast %cst : f32 to vector<16x16xf32>
    %5 = vector.broadcast %cst_2 : f32 to vector<16x16xf32>
    %6 = arith.select %3, %4, %5 : vector<16x16xi1>, vector<16x16xf32>
    %7 = vector.extract_strided_slice %0 {offsets = [0, 2, 0], sizes = [1, 16, 32], strides = [1, 1, 1]} : vector<1x18x32xbf16> to vector<1x16x32xbf16>
    %8 = vector.extract_strided_slice %0 {offsets = [0, 0, 0], sizes = [1, 16, 32], strides = [1, 1, 1]} : vector<1x18x32xbf16> to vector<1x16x32xbf16>
    %9 = vector.extract_strided_slice %0 {offsets = [0, 1, 0], sizes = [1, 16, 32], strides = [1, 1, 1]} : vector<1x18x32xbf16> to vector<1x16x32xbf16>
    %10 = vector.extract_strided_slice %0 {offsets = [0, 2, 0], sizes = [1, 16, 32], strides = [1, 1, 1]} : vector<1x18x32xbf16> to vector<1x16x32xbf16>
    %11 = tpu.concatenate %8, %9, %10 in 2 : vector<1x16x32xbf16>, vector<1x16x32xbf16>, vector<1x16x32xbf16> -> vector<1x16x96xbf16>
    %c0_3 = arith.constant 0 : index
    %c0_4 = arith.constant 0 : index
    %12 = vector.load %arg4[%c0_3, %c0_4] : memref<96x256xbf16, #tpu.memory_space<vmem>>, vector<96x256xbf16>
    "tpu.trace_start"() <{level = 10 : i32, message = "btc,co->bto"}> : () -> ()
    %cst_5 = arith.constant dense<0.000000e+00> : vector<1x16x256xf32>
    %13 = tpu.matmul %11, %12, %cst_5 {dimension_numbers = #tpu.dot_dimension_numbers<[2], [0], [0, 1], [1], [0, 0, 0, 1, 1, 1], [], []>} : vector<1x16x96xbf16>, vector<96x256xbf16>, vector<1x16x256xf32> -> vector<1x16x256xf32>
    "tpu.trace_stop"() : () -> ()
    %c0_6 = arith.constant 0 : index
    %c0_7 = arith.constant 0 : index
    %14 = vector.load %arg5[%c0_6, %c0_7] : memref<1x256xf32, #tpu.memory_space<vmem>>, vector<1x256xf32>
    %15 = vector.shape_cast %14 : vector<1x256xf32> to vector<1x1x256xf32>
    %16 = vector.broadcast %15 : vector<1x1x256xf32> to vector<1x16x256xf32>
    %17 = arith.addf %13, %16 : vector<1x16x256xf32>
    %c0_8 = arith.constant 0 : index
    %c0_9 = arith.constant 0 : index
    %18 = vector.load %arg2[%c0_8, %c0_9] : memref<32x128xbf16, #tpu.memory_space<vmem>>, vector<32x128xbf16>
    "tpu.trace_start"() <{level = 10 : i32, message = "bte,ef->btf"}> : () -> ()
    %cst_10 = arith.constant dense<0.000000e+00> : vector<1x16x128xf32>
    %19 = tpu.matmul %7, %18, %cst_10 {dimension_numbers = #tpu.dot_dimension_numbers<[2], [0], [0, 1], [1], [0, 0, 0, 1, 1, 1], [], []>} : vector<1x16x32xbf16>, vector<32x128xbf16>, vector<1x16x128xf32> -> vector<1x16x128xf32>
    "tpu.trace_stop"() : () -> ()
    %c0_11 = arith.constant 0 : index
    %c0_12 = arith.constant 0 : index
    %20 = vector.load %arg3[%c0_11, %c0_12] : memref<1x128xf32, #tpu.memory_space<vmem>>, vector<1x128xf32>
    %21 = vector.shape_cast %20 : vector<1x128xf32> to vector<1x1x128xf32>
    %22 = vector.broadcast %21 : vector<1x1x128xf32> to vector<1x16x128xf32>
    %23 = arith.addf %19, %22 : vector<1x16x128xf32>
    %24 = vector.extract_strided_slice %17 {offsets = [0, 0, 0], sizes = [1, 16, 128], strides = [1, 1, 1]} : vector<1x16x256xf32> to vector<1x16x128xf32>
    %25 = arith.truncf %24 : vector<1x16x128xf32> to vector<1x16x128xbf16>
    %26 = vector.extract_strided_slice %17 {offsets = [0, 0, 128], sizes = [1, 16, 128], strides = [1, 1, 1]} : vector<1x16x256xf32> to vector<1x16x128xf32>
    %27 = arith.truncf %26 : vector<1x16x128xf32> to vector<1x16x128xbf16>
    %28 = arith.truncf %23 : vector<1x16x128xf32> to vector<1x16x128xbf16>
    %29 = vector.extract_strided_slice %25 {offsets = [0, 0, 0], sizes = [1, 16, 32], strides = [1, 1, 1]} : vector<1x16x128xbf16> to vector<1x16x32xbf16>
    %30 = vector.extract_strided_slice %27 {offsets = [0, 0, 0], sizes = [1, 16, 32], strides = [1, 1, 1]} : vector<1x16x128xbf16> to vector<1x16x32xbf16>
    %31 = vector.extract_strided_slice %28 {offsets = [0, 0, 0], sizes = [1, 16, 32], strides = [1, 1, 1]} : vector<1x16x128xbf16> to vector<1x16x32xbf16>
    "tpu.trace_start"() <{level = 10 : i32, message = "bte,bse->bts"}> : () -> ()
    %cst_13 = arith.constant dense<0.000000e+00> : vector<1x16x16xf32>
    %32 = tpu.matmul %29, %30, %cst_13 {dimension_numbers = #tpu.dot_dimension_numbers<[2], [2], [1], [1], [0, 0, 0, 1, 1, 1], [0], [0]>} : vector<1x16x32xbf16>, vector<1x16x32xbf16>, vector<1x16x16xf32> -> vector<1x16x16xf32>
    "tpu.trace_stop"() : () -> ()
    %33 = vector.shape_cast %6 : vector<16x16xf32> to vector<1x16x16xf32>
    %34 = arith.addf %32, %33 : vector<1x16x16xf32>
    %cst_14 = arith.constant dense<0xFF800000> : vector<1x16xf32>
    %35 = vector.multi_reduction <maximumf>, %34, %cst_14 [2] : vector<1x16x16xf32> to vector<1x16xf32>
    %36 = vector.shape_cast %35 : vector<1x16xf32> to vector<1x16x1xf32>
    %37 = vector.broadcast %36 : vector<1x16x1xf32> to vector<1x16x16xf32>
    %38 = arith.subf %34, %37 : vector<1x16x16xf32>
    %39 = math.exp %38 : vector<1x16x16xf32>
    %cst_15 = arith.constant dense<0.000000e+00> : vector<1x16xf32>
    %40 = vector.multi_reduction <add>, %39, %cst_15 [2] : vector<1x16x16xf32> to vector<1x16xf32>
    %41 = vector.shape_cast %40 : vector<1x16xf32> to vector<1x16x1xf32>
    %42 = tpu.reciprocal %41 {approx = true} : vector<1x16x1xf32> -> vector<1x16x1xf32>
    %43 = vector.broadcast %42 : vector<1x16x1xf32> to vector<1x16x16xf32>
    %44 = arith.mulf %39, %43 : vector<1x16x16xf32>
    %45 = arith.truncf %44 : vector<1x16x16xf32> to vector<1x16x16xbf16>
    "tpu.trace_start"() <{level = 10 : i32, message = "bts,bse->bte"}> : () -> ()
    %cst_16 = arith.constant dense<0.000000e+00> : vector<1x16x32xf32>
    %46 = tpu.matmul %45, %31, %cst_16 {dimension_numbers = #tpu.dot_dimension_numbers<[2], [1], [1], [2], [0, 0, 0, 1, 1, 2], [0], [0]>} : vector<1x16x16xbf16>, vector<1x16x32xbf16>, vector<1x16x32xf32> -> vector<1x16x32xf32>
    "tpu.trace_stop"() : () -> ()
    %47 = arith.truncf %46 : vector<1x16x32xf32> to vector<1x16x32xbf16>
    %48 = vector.extract_strided_slice %25 {offsets = [0, 0, 32], sizes = [1, 16, 32], strides = [1, 1, 1]} : vector<1x16x128xbf16> to vector<1x16x32xbf16>
    %49 = vector.extract_strided_slice %27 {offsets = [0, 0, 32], sizes = [1, 16, 32], strides = [1, 1, 1]} : vector<1x16x128xbf16> to vector<1x16x32xbf16>
    %50 = vector.extract_strided_slice %28 {offsets = [0, 0, 32], sizes = [1, 16, 32], strides = [1, 1, 1]} : vector<1x16x128xbf16> to vector<1x16x32xbf16>
    "tpu.trace_start"() <{level = 10 : i32, message = "bte,bse->bts"}> : () -> ()
    %cst_17 = arith.constant dense<0.000000e+00> : vector<1x16x16xf32>
    %51 = tpu.matmul %48, %49, %cst_17 {dimension_numbers = #tpu.dot_dimension_numbers<[2], [2], [1], [1], [0, 0, 0, 1, 1, 1], [0], [0]>} : vector<1x16x32xbf16>, vector<1x16x32xbf16>, vector<1x16x16xf32> -> vector<1x16x16xf32>
    "tpu.trace_stop"() : () -> ()
    %52 = vector.shape_cast %6 : vector<16x16xf32> to vector<1x16x16xf32>
    %53 = arith.addf %51, %52 : vector<1x16x16xf32>
    %cst_18 = arith.constant dense<0xFF800000> : vector<1x16xf32>
    %54 = vector.multi_reduction <maximumf>, %53, %cst_18 [2] : vector<1x16x16xf32> to vector<1x16xf32>
    %55 = vector.shape_cast %54 : vector<1x16xf32> to vector<1x16x1xf32>
    %56 = vector.broadcast %55 : vector<1x16x1xf32> to vector<1x16x16xf32>
    %57 = arith.subf %53, %56 : vector<1x16x16xf32>
    %58 = math.exp %57 : vector<1x16x16xf32>
    %cst_19 = arith.constant dense<0.000000e+00> : vector<1x16xf32>
    %59 = vector.multi_reduction <add>, %58, %cst_19 [2] : vector<1x16x16xf32> to vector<1x16xf32>
    %60 = vector.shape_cast %59 : vector<1x16xf32> to vector<1x16x1xf32>
    %61 = tpu.reciprocal %60 {approx = true} : vector<1x16x1xf32> -> vector<1x16x1xf32>
    %62 = vector.broadcast %61 : vector<1x16x1xf32> to vector<1x16x16xf32>
    %63 = arith.mulf %58, %62 : vector<1x16x16xf32>
    %64 = arith.truncf %63 : vector<1x16x16xf32> to vector<1x16x16xbf16>
    "tpu.trace_start"() <{level = 10 : i32, message = "bts,bse->bte"}> : () -> ()
    %cst_20 = arith.constant dense<0.000000e+00> : vector<1x16x32xf32>
    %65 = tpu.matmul %64, %50, %cst_20 {dimension_numbers = #tpu.dot_dimension_numbers<[2], [1], [1], [2], [0, 0, 0, 1, 1, 2], [0], [0]>} : vector<1x16x16xbf16>, vector<1x16x32xbf16>, vector<1x16x32xf32> -> vector<1x16x32xf32>
    "tpu.trace_stop"() : () -> ()
    %66 = arith.truncf %65 : vector<1x16x32xf32> to vector<1x16x32xbf16>
    %67 = vector.extract_strided_slice %25 {offsets = [0, 0, 64], sizes = [1, 16, 32], strides = [1, 1, 1]} : vector<1x16x128xbf16> to vector<1x16x32xbf16>
    %68 = vector.extract_strided_slice %27 {offsets = [0, 0, 64], sizes = [1, 16, 32], strides = [1, 1, 1]} : vector<1x16x128xbf16> to vector<1x16x32xbf16>
    %69 = vector.extract_strided_slice %28 {offsets = [0, 0, 64], sizes = [1, 16, 32], strides = [1, 1, 1]} : vector<1x16x128xbf16> to vector<1x16x32xbf16>
    "tpu.trace_start"() <{level = 10 : i32, message = "bte,bse->bts"}> : () -> ()
    %cst_21 = arith.constant dense<0.000000e+00> : vector<1x16x16xf32>
    %70 = tpu.matmul %67, %68, %cst_21 {dimension_numbers = #tpu.dot_dimension_numbers<[2], [2], [1], [1], [0, 0, 0, 1, 1, 1], [0], [0]>} : vector<1x16x32xbf16>, vector<1x16x32xbf16>, vector<1x16x16xf32> -> vector<1x16x16xf32>
    "tpu.trace_stop"() : () -> ()
    %71 = vector.shape_cast %6 : vector<16x16xf32> to vector<1x16x16xf32>
    %72 = arith.addf %70, %71 : vector<1x16x16xf32>
    %cst_22 = arith.constant dense<0xFF800000> : vector<1x16xf32>
    %73 = vector.multi_reduction <maximumf>, %72, %cst_22 [2] : vector<1x16x16xf32> to vector<1x16xf32>
    %74 = vector.shape_cast %73 : vector<1x16xf32> to vector<1x16x1xf32>
    %75 = vector.broadcast %74 : vector<1x16x1xf32> to vector<1x16x16xf32>
    %76 = arith.subf %72, %75 : vector<1x16x16xf32>
    %77 = math.exp %76 : vector<1x16x16xf32>
    %cst_23 = arith.constant dense<0.000000e+00> : vector<1x16xf32>
    %78 = vector.multi_reduction <add>, %77, %cst_23 [2] : vector<1x16x16xf32> to vector<1x16xf32>
    %79 = vector.shape_cast %78 : vector<1x16xf32> to vector<1x16x1xf32>
    %80 = tpu.reciprocal %79 {approx = true} : vector<1x16x1xf32> -> vector<1x16x1xf32>
    %81 = vector.broadcast %80 : vector<1x16x1xf32> to vector<1x16x16xf32>
    %82 = arith.mulf %77, %81 : vector<1x16x16xf32>
    %83 = arith.truncf %82 : vector<1x16x16xf32> to vector<1x16x16xbf16>
    "tpu.trace_start"() <{level = 10 : i32, message = "bts,bse->bte"}> : () -> ()
    %cst_24 = arith.constant dense<0.000000e+00> : vector<1x16x32xf32>
    %84 = tpu.matmul %83, %69, %cst_24 {dimension_numbers = #tpu.dot_dimension_numbers<[2], [1], [1], [2], [0, 0, 0, 1, 1, 2], [0], [0]>} : vector<1x16x16xbf16>, vector<1x16x32xbf16>, vector<1x16x32xf32> -> vector<1x16x32xf32>
    "tpu.trace_stop"() : () -> ()
    %85 = arith.truncf %84 : vector<1x16x32xf32> to vector<1x16x32xbf16>
    %86 = vector.extract_strided_slice %25 {offsets = [0, 0, 96], sizes = [1, 16, 32], strides = [1, 1, 1]} : vector<1x16x128xbf16> to vector<1x16x32xbf16>
    %87 = vector.extract_strided_slice %27 {offsets = [0, 0, 96], sizes = [1, 16, 32], strides = [1, 1, 1]} : vector<1x16x128xbf16> to vector<1x16x32xbf16>
    %88 = vector.extract_strided_slice %28 {offsets = [0, 0, 96], sizes = [1, 16, 32], strides = [1, 1, 1]} : vector<1x16x128xbf16> to vector<1x16x32xbf16>
    "tpu.trace_start"() <{level = 10 : i32, message = "bte,bse->bts"}> : () -> ()
    %cst_25 = arith.constant dense<0.000000e+00> : vector<1x16x16xf32>
    %89 = tpu.matmul %86, %87, %cst_25 {dimension_numbers = #tpu.dot_dimension_numbers<[2], [2], [1], [1], [0, 0, 0, 1, 1, 1], [0], [0]>} : vector<1x16x32xbf16>, vector<1x16x32xbf16>, vector<1x16x16xf32> -> vector<1x16x16xf32>
    "tpu.trace_stop"() : () -> ()
    %90 = vector.shape_cast %6 : vector<16x16xf32> to vector<1x16x16xf32>
    %91 = arith.addf %89, %90 : vector<1x16x16xf32>
    %cst_26 = arith.constant dense<0xFF800000> : vector<1x16xf32>
    %92 = vector.multi_reduction <maximumf>, %91, %cst_26 [2] : vector<1x16x16xf32> to vector<1x16xf32>
    %93 = vector.shape_cast %92 : vector<1x16xf32> to vector<1x16x1xf32>
    %94 = vector.broadcast %93 : vector<1x16x1xf32> to vector<1x16x16xf32>
    %95 = arith.subf %91, %94 : vector<1x16x16xf32>
    %96 = math.exp %95 : vector<1x16x16xf32>
    %cst_27 = arith.constant dense<0.000000e+00> : vector<1x16xf32>
    %97 = vector.multi_reduction <add>, %96, %cst_27 [2] : vector<1x16x16xf32> to vector<1x16xf32>
    %98 = vector.shape_cast %97 : vector<1x16xf32> to vector<1x16x1xf32>
    %99 = tpu.reciprocal %98 {approx = true} : vector<1x16x1xf32> -> vector<1x16x1xf32>
    %100 = vector.broadcast %99 : vector<1x16x1xf32> to vector<1x16x16xf32>
    %101 = arith.mulf %96, %100 : vector<1x16x16xf32>
    %102 = arith.truncf %101 : vector<1x16x16xf32> to vector<1x16x16xbf16>
    "tpu.trace_start"() <{level = 10 : i32, message = "bts,bse->bte"}> : () -> ()
    %cst_28 = arith.constant dense<0.000000e+00> : vector<1x16x32xf32>
    %103 = tpu.matmul %102, %88, %cst_28 {dimension_numbers = #tpu.dot_dimension_numbers<[2], [1], [1], [2], [0, 0, 0, 1, 1, 2], [0], [0]>} : vector<1x16x16xbf16>, vector<1x16x32xbf16>, vector<1x16x32xf32> -> vector<1x16x32xf32>
    "tpu.trace_stop"() : () -> ()
    %104 = arith.truncf %103 : vector<1x16x32xf32> to vector<1x16x32xbf16>
    %105 = tpu.concatenate %47, %66, %85, %104 in 2 : vector<1x16x32xbf16>, vector<1x16x32xbf16>, vector<1x16x32xbf16>, vector<1x16x32xbf16> -> vector<1x16x128xbf16>
    %c0_29 = arith.constant 0 : index
    %c0_30 = arith.constant 0 : index
    %106 = vector.load %arg6[%c0_29, %c0_30] : memref<128x32xbf16, #tpu.memory_space<vmem>>, vector<128x32xbf16>
    "tpu.trace_start"() <{level = 10 : i32, message = "btf,fe->bte"}> : () -> ()
    %cst_31 = arith.constant dense<0.000000e+00> : vector<1x16x32xf32>
    %107 = tpu.matmul %105, %106, %cst_31 {dimension_numbers = #tpu.dot_dimension_numbers<[2], [0], [0, 1], [1], [0, 0, 0, 1, 1, 1], [], []>} : vector<1x16x128xbf16>, vector<128x32xbf16>, vector<1x16x32xf32> -> vector<1x16x32xf32>
    "tpu.trace_stop"() : () -> ()
    %c0_32 = arith.constant 0 : index
    %c0_33 = arith.constant 0 : index
    %108 = vector.load %arg7[%c0_32, %c0_33] : memref<1x32xf32, #tpu.memory_space<vmem>>, vector<1x32xf32>
    %109 = vector.shape_cast %108 : vector<1x32xf32> to vector<1x1x32xf32>
    %110 = vector.broadcast %109 : vector<1x1x32xf32> to vector<1x16x32xf32>
    %111 = arith.addf %107, %110 : vector<1x16x32xf32>
    %c0_34 = arith.constant 0 : index
    %c0_35 = arith.constant 0 : index
    %c0_36 = arith.constant 0 : index
    %112 = vector.load %arg8[%c0_34, %c0_35, %c0_36] : memref<1x16x32xf32, #tpu.memory_space<vmem>>, vector<1x16x32xf32>
    tpu.vector_store %arg8[%c0_34, %c0_35, %c0_36], %111 {strides = array<i32>} : memref<1x16x32xf32, #tpu.memory_space<vmem>>, vector<1x16x32xf32>,
    return
  }
  func.func @transform_0(%arg0: i32) -> (i32, i32, i32) {
    %c0_i32 = arith.constant 0 : i32
    %c0_i32_0 = arith.constant 0 : i32
    %c0_i32_1 = arith.constant 0 : i32
    return %arg0, %c0_i32, %c0_i32_0 : i32, i32, i32
  }
  func.func @transform_1(%arg0: i32) -> (i32, i32) {
    %c0_i32 = arith.constant 0 : i32
    %c0_i32_0 = arith.constant 0 : i32
    %c0_i32_1 = arith.constant 0 : i32
    return %c0_i32, %c0_i32_0 : i32, i32
  }
  func.func @transform_2(%arg0: i32) -> (i32, i32) {
    %c0_i32 = arith.constant 0 : i32
    %c0_i32_0 = arith.constant 0 : i32
    %c0_i32_1 = arith.constant 0 : i32
    return %c0_i32, %c0_i32_0 : i32, i32
  }
  func.func @transform_3(%arg0: i32) -> (i32, i32) {
    %c0_i32 = arith.constant 0 : i32
    %c0_i32_0 = arith.constant 0 : i32
    %c0_i32_1 = arith.constant 0 : i32
    return %c0_i32, %c0_i32_0 : i32, i32
  }
  func.func @transform_4(%arg0: i32) -> (i32, i32) {
    %c0_i32 = arith.constant 0 : i32
    %c0_i32_0 = arith.constant 0 : i32
    %c0_i32_1 = arith.constant 0 : i32
    return %c0_i32, %c0_i32_0 : i32, i32
  }
  func.func @transform_5(%arg0: i32) -> (i32, i32) {
    %c0_i32 = arith.constant 0 : i32
    %c0_i32_0 = arith.constant 0 : i32
    %c0_i32_1 = arith.constant 0 : i32
    return %c0_i32, %c0_i32_0 : i32, i32
  }
  func.func @transform_6(%arg0: i32) -> (i32, i32) {
    %c0_i32 = arith.constant 0 : i32
    %c0_i32_0 = arith.constant 0 : i32
    %c0_i32_1 = arith.constant 0 : i32
    return %c0_i32, %c0_i32_0 : i32, i32
  }
  func.func @transform_7(%arg0: i32) -> (i32, i32, i32) {
    %c0_i32 = arith.constant 0 : i32
    %c0_i32_0 = arith.constant 0 : i32
    %c0_i32_1 = arith.constant 0 : i32
    return %arg0, %c0_i32, %c0_i32_0 : i32, i32, i32
  }
}

module attributes {stable_mosaic.version = 11 : i64} {
  func.func @_attention_kernel(%arg0: i32, %arg1: memref<1x18x32xbf16, #tpu.memory_space<vmem>>, %arg2: memref<32x128xbf16, #tpu.memory_space<vmem>>, %arg3: memref<1x128xf32, #tpu.memory_space<vmem>>, %arg4: memref<96x256xbf16, #tpu.memory_space<vmem>>, %arg5: memref<1x256xf32, #tpu.memory_space<vmem>>, %arg6: memref<128x32xbf16, #tpu.memory_space<vmem>>, %arg7: memref<1x32xf32, #tpu.memory_space<vmem>>, %arg8: memref<1x16x32xf32, #tpu.memory_space<vmem>>) attributes {dimension_semantics = [#tpu.dimension_semantics<parallel>], iteration_bounds = array<i64: 2>, scalar_prefetch = 0 : i64, scratch_operands = 0 : i64, tpu.core_type = #tpu.core_type<tc>, window_params = [{transform_indices = @transform_0, window_bounds = array<i64: 1, 18, 32>}, {pipeline_mode = #tpu.pipeline_mode<synchronous>, transform_indices = @transform_1, window_bounds = array<i64: 32, 128>}, {pipeline_mode = #tpu.pipeline_mode<synchronous>, transform_indices = @transform_2, window_bounds = array<i64: 1, 128>}, {pipeline_mode = #tpu.pipeline_mode<synchronous>, transform_indices = @transform_3, window_bounds = array<i64: 96, 256>}, {pipeline_mode = #tpu.pipeline_mode<synchronous>, transform_indices = @transform_4, window_bounds = array<i64: 1, 256>}, {pipeline_mode = #tpu.pipeline_mode<synchronous>, transform_indices = @transform_5, window_bounds = array<i64: 128, 32>}, {pipeline_mode = #tpu.pipeline_mode<synchronous>, transform_indices = @transform_6, window_bounds = array<i64: 1, 32>}, {transform_indices = @transform_7, window_bounds = array<i64: 1, 16, 32>}]} {
    %c0 = arith.constant 0 : index
    %c0_0 = arith.constant 0 : index
    %c0_1 = arith.constant 0 : index
    %0 = vector.load %arg1[%c0, %c0_0, %c0_1] : memref<1x18x32xbf16, #tpu.memory_space<vmem>>, vector<1x18x32xbf16>
    %1 = tpu.iota {dimensions = array<i32: 0>} : vector<16x16xi32>
    %2 = tpu.iota {dimensions = array<i32: 1>} : vector<16x16xi32>
    %3 = arith.cmpi sle, %2, %1 : vector<16x16xi32>
    %cst = arith.constant 0.000000e+00 : f32
    %cst_2 = arith.constant -1.000000e+09 : f32
    %4 = vector.broadcast %cst : f32 to vector<16x16xf32>
    %5 = vector.broadcast %cst_2 : f32 to vector<16x16xf32>
    %6 = arith.select %3, %4, %5 : vector<16x16xi1>, vector<16x16xf32>
    %7 = vector.extract_strided_slice %0 {offsets = [0, 2, 0], sizes = [1, 16, 32], strides = [1, 1, 1]} : vector<1x18x32xbf16> to vector<1x16x32xbf16>
    %8 = vector.extract_strided_slice %0 {offsets = [0, 0, 0], sizes = [1, 16, 32], strides = [1, 1, 1]} : vector<1x18x32xbf16> to vector<1x16x32xbf16>
    %9 = vector.extract_strided_slice %0 {offsets = [0, 1, 0], sizes = [1, 16, 32], strides = [1, 1, 1]} : vector<1x18x32xbf16> to vector<1x16x32xbf16>
    %10 = vector.extract_strided_slice %0 {offsets = [0, 2, 0], sizes = [1, 16, 32], strides = [1, 1, 1]} : vector<1x18x32xbf16> to vector<1x16x32xbf16>
    %11 = tpu.concatenate %8, %9, %10 in 2 : vector<1x16x32xbf16>, vector<1x16x32xbf16>, vector<1x16x32xbf16> -> vector<1x16x96xbf16>
    %c0_3 = arith.constant 0 : index
    %c0_4 = arith.constant 0 : index
    %12 = vector.load %arg4[%c0_3, %c0_4] : memref<96x256xbf16, #tpu.memory_space<vmem>>, vector<96x256xbf16>
    "tpu.trace_start"() <{level = 10 : i32, message = "btc,co->bto"}> : () -> ()
    %cst_5 = arith.constant dense<0.000000e+00> : vector<1x16x256xf32>
    %13 = tpu.matmul %11, %12, %cst_5 {dimension_numbers = #tpu.dot_dimension_numbers<[2], [0], [0, 1], [1], [0, 0, 0, 1, 1, 1], [], []>} : vector<1x16x96xbf16>, vector<96x256xbf16>, vector<1x16x256xf32> -> vector<1x16x256xf32>
    "tpu.trace_stop"() : () -> ()
    %c0_6 = arith.constant 0 : index
    %c0_7 = arith.constant 0 : index
    %14 = vector.load %arg5[%c0_6, %c0_7] : memref<1x256xf32, #tpu.memory_space<vmem>>, vector<1x256xf32>
    %15 = vector.shape_cast %14 : vector<1x256xf32> to vector<1x1x256xf32>
    %16 = vector.broadcast %15 : vector<1x1x256xf32> to vector<1x16x256xf32>
    %17 = arith.addf %13, %16 : vector<1x16x256xf32>
    %c0_8 = arith.constant 0 : index
    %c0_9 = arith.constant 0 : index
    %18 = vector.load %arg2[%c0_8, %c0_9] : memref<32x128xbf16, #tpu.memory_space<vmem>>, vector<32x128xbf16>
    "tpu.trace_start"() <{level = 10 : i32, message = "bte,ef->btf"}> : () -> ()
    %cst_10 = arith.constant dense<0.000000e+00> : vector<1x16x128xf32>
    %19 = tpu.matmul %7, %18, %cst_10 {dimension_numbers = #tpu.dot_dimension_numbers<[2], [0], [0, 1], [1], [0, 0, 0, 1, 1, 1], [], []>} : vector<1x16x32xbf16>, vector<32x128xbf16>, vector<1x16x128xf32> -> vector<1x16x128xf32>
    "tpu.trace_stop"() : () -> ()
    %c0_11 = arith.constant 0 : index
    %c0_12 = arith.constant 0 : index
    %20 = vector.load %arg3[%c0_11, %c0_12] : memref<1x128xf32, #tpu.memory_space<vmem>>, vector<1x128xf32>
    %21 = vector.shape_cast %20 : vector<1x128xf32> to vector<1x1x128xf32>
    %22 = vector.broadcast %21 : vector<1x1x128xf32> to vector<1x16x128xf32>
    %23 = arith.addf %19, %22 : vector<1x16x128xf32>
    %24 = vector.extract_strided_slice %17 {offsets = [0, 0, 0], sizes = [1, 16, 128], strides = [1, 1, 1]} : vector<1x16x256xf32> to vector<1x16x128xf32>
    %25 = arith.truncf %24 : vector<1x16x128xf32> to vector<1x16x128xbf16>
    %26 = vector.extract_strided_slice %17 {offsets = [0, 0, 128], sizes = [1, 16, 128], strides = [1, 1, 1]} : vector<1x16x256xf32> to vector<1x16x128xf32>
    %27 = arith.truncf %26 : vector<1x16x128xf32> to vector<1x16x128xbf16>
    %28 = arith.truncf %23 : vector<1x16x128xf32> to vector<1x16x128xbf16>
    %29 = vector.extract_strided_slice %25 {offsets = [0, 0, 0], sizes = [1, 16, 32], strides = [1, 1, 1]} : vector<1x16x128xbf16> to vector<1x16x32xbf16>
    %30 = vector.extract_strided_slice %27 {offsets = [0, 0, 0], sizes = [1, 16, 32], strides = [1, 1, 1]} : vector<1x16x128xbf16> to vector<1x16x32xbf16>
    %31 = vector.extract_strided_slice %28 {offsets = [0, 0, 0], sizes = [1, 16, 32], strides = [1, 1, 1]} : vector<1x16x128xbf16> to vector<1x16x32xbf16>
    "tpu.trace_start"() <{level = 10 : i32, message = "bte,bse->bts"}> : () -> ()
    %cst_13 = arith.constant dense<0.000000e+00> : vector<1x16x16xf32>
    %32 = tpu.matmul %29, %30, %cst_13 {dimension_numbers = #tpu.dot_dimension_numbers<[2], [2], [1], [1], [0, 0, 0, 1, 1, 1], [0], [0]>} : vector<1x16x32xbf16>, vector<1x16x32xbf16>, vector<1x16x16xf32> -> vector<1x16x16xf32>
    "tpu.trace_stop"() : () -> ()
    %33 = vector.shape_cast %6 : vector<16x16xf32> to vector<1x16x16xf32>
    %34 = arith.addf %32, %33 : vector<1x16x16xf32>
    %cst_14 = arith.constant dense<0xFF800000> : vector<1x16xf32>
    %35 = vector.multi_reduction <maximumf>, %34, %cst_14 [2] : vector<1x16x16xf32> to vector<1x16xf32>
    %36 = vector.shape_cast %35 : vector<1x16xf32> to vector<1x16x1xf32>
    %37 = vector.broadcast %36 : vector<1x16x1xf32> to vector<1x16x16xf32>
    %38 = arith.subf %34, %37 : vector<1x16x16xf32>
    %39 = math.exp %38 : vector<1x16x16xf32>
    %cst_15 = arith.constant dense<0.000000e+00> : vector<1x16xf32>
    %40 = vector.multi_reduction <add>, %39, %cst_15 [2] : vector<1x16x16xf32> to vector<1x16xf32>
    %41 = vector.shape_cast %40 : vector<1x16xf32> to vector<1x16x1xf32>
    %42 = tpu.reciprocal %41 {approx = true} : vector<1x16x1xf32> -> vector<1x16x1xf32>
    %43 = vector.broadcast %42 : vector<1x16x1xf32> to vector<1x16x16xf32>
    %44 = arith.mulf %39, %43 : vector<1x16x16xf32>
    %45 = arith.truncf %44 : vector<1x16x16xf32> to vector<1x16x16xbf16>
    "tpu.trace_start"() <{level = 10 : i32, message = "bts,bse->bte"}> : () -> ()
    %cst_16 = arith.constant dense<0.000000e+00> : vector<1x16x32xf32>
    %46 = tpu.matmul %45, %31, %cst_16 {dimension_numbers = #tpu.dot_dimension_numbers<[2], [1], [1], [2], [0, 0, 0, 1, 1, 2], [0], [0]>} : vector<1x16x16xbf16>, vector<1x16x32xbf16>, vector<1x16x32xf32> -> vector<1x16x32xf32>
    "tpu.trace_stop"() : () -> ()
    %47 = arith.truncf %46 : vector<1x16x32xf32> to vector<1x16x32xbf16>
    %48 = vector.extract_strided_slice %25 {offsets = [0, 0, 32], sizes = [1, 16, 32], strides = [1, 1, 1]} : vector<1x16x128xbf16> to vector<1x16x32xbf16>
    %49 = vector.extract_strided_slice %27 {offsets = [0, 0, 32], sizes = [1, 16, 32], strides = [1, 1, 1]} : vector<1x16x128xbf16> to vector<1x16x32xbf16>
    %50 = vector.extract_strided_slice %28 {offsets = [0, 0, 32], sizes = [1, 16, 32], strides = [1, 1, 1]} : vector<1x16x128xbf16> to vector<1x16x32xbf16>
    "tpu.trace_start"() <{level = 10 : i32, message = "bte,bse->bts"}> : () -> ()
    %cst_17 = arith.constant dense<0.000000e+00> : vector<1x16x16xf32>
    %51 = tpu.matmul %48, %49, %cst_17 {dimension_numbers = #tpu.dot_dimension_numbers<[2], [2], [1], [1], [0, 0, 0, 1, 1, 1], [0], [0]>} : vector<1x16x32xbf16>, vector<1x16x32xbf16>, vector<1x16x16xf32> -> vector<1x16x16xf32>
    "tpu.trace_stop"() : () -> ()
    %52 = vector.shape_cast %6 : vector<16x16xf32> to vector<1x16x16xf32>
    %53 = arith.addf %51, %52 : vector<1x16x16xf32>
    %cst_18 = arith.constant dense<0xFF800000> : vector<1x16xf32>
    %54 = vector.multi_reduction <maximumf>, %53, %cst_18 [2] : vector<1x16x16xf32> to vector<1x16xf32>
    %55 = vector.shape_cast %54 : vector<1x16xf32> to vector<1x16x1xf32>
    %56 = vector.broadcast %55 : vector<1x16x1xf32> to vector<1x16x16xf32>
    %57 = arith.subf %53, %56 : vector<1x16x16xf32>
    %58 = math.exp %57 : vector<1x16x16xf32>
    %cst_19 = arith.constant dense<0.000000e+00> : vector<1x16xf32>
    %59 = vector.multi_reduction <add>, %58, %cst_19 [2] : vector<1x16x16xf32> to vector<1x16xf32>
    %60 = vector.shape_cast %59 : vector<1x16xf32> to vector<1x16x1xf32>
    %61 = tpu.reciprocal %60 {approx = true} : vector<1x16x1xf32> -> vector<1x16x1xf32>
    %62 = vector.broadcast %61 : vector<1x16x1xf32> to vector<1x16x16xf32>
    %63 = arith.mulf %58, %62 : vector<1x16x16xf32>
    %64 = arith.truncf %63 : vector<1x16x16xf32> to vector<1x16x16xbf16>
    "tpu.trace_start"() <{level = 10 : i32, message = "bts,bse->bte"}> : () -> ()
    %cst_20 = arith.constant dense<0.000000e+00> : vector<1x16x32xf32>
    %65 = tpu.matmul %64, %50, %cst_20 {dimension_numbers = #tpu.dot_dimension_numbers<[2], [1], [1], [2], [0, 0, 0, 1, 1, 2], [0], [0]>} : vector<1x16x16xbf16>, vector<1x16x32xbf16>, vector<1x16x32xf32> -> vector<1x16x32xf32>
    "tpu.trace_stop"() : () -> ()
    %66 = arith.truncf %65 : vector<1x16x32xf32> to vector<1x16x32xbf16>
    %67 = vector.extract_strided_slice %25 {offsets = [0, 0, 64], sizes = [1, 16, 32], strides = [1, 1, 1]} : vector<1x16x128xbf16> to vector<1x16x32xbf16>
    %68 = vector.extract_strided_slice %27 {offsets = [0, 0, 64], sizes = [1, 16, 32], strides = [1, 1, 1]} : vector<1x16x128xbf16> to vector<1x16x32xbf16>
    %69 = vector.extract_strided_slice %28 {offsets = [0, 0, 64], sizes = [1, 16, 32], strides = [1, 1, 1]} : vector<1x16x128xbf16> to vector<1x16x32xbf16>
    "tpu.trace_start"() <{level = 10 : i32, message = "bte,bse->bts"}> : () -> ()
    %cst_21 = arith.constant dense<0.000000e+00> : vector<1x16x16xf32>
    %70 = tpu.matmul %67, %68, %cst_21 {dimension_numbers = #tpu.dot_dimension_numbers<[2], [2], [1], [1], [0, 0, 0, 1, 1, 1], [0], [0]>} : vector<1x16x32xbf16>, vector<1x16x32xbf16>, vector<1x16x16xf32> -> vector<1x16x16xf32>
    "tpu.trace_stop"() : () -> ()
    %71 = vector.shape_cast %6 : vector<16x16xf32> to vector<1x16x16xf32>
    %72 = arith.addf %70, %71 : vector<1x16x16xf32>
    %cst_22 = arith.constant dense<0xFF800000> : vector<1x16xf32>
    %73 = vector.multi_reduction <maximumf>, %72, %cst_22 [2] : vector<1x16x16xf32> to vector<1x16xf32>
    %74 = vector.shape_cast %73 : vector<1x16xf32> to vector<1x16x1xf32>
    %75 = vector.broadcast %74 : vector<1x16x1xf32> to vector<1x16x16xf32>
    %76 = arith.subf %72, %75 : vector<1x16x16xf32>
    %77 = math.exp %76 : vector<1x16x16xf32>
    %cst_23 = arith.constant dense<0.000000e+00> : vector<1x16xf32>
    %78 = vector.multi_reduction <add>, %77, %cst_23 [2] : vector<1x16x16xf32> to vector<1x16xf32>
    %79 = vector.shape_cast %78 : vector<1x16xf32> to vector<1x16x1xf32>
    %80 = tpu.reciprocal %79 {approx = true} : vector<1x16x1xf32> -> vector<1x16x1xf32>
    %81 = vector.broadcast %80 : vector<1x16x1xf32> to vector<1x16x16xf32>
    %82 = arith.mulf %77, %81 : vector<1x16x16xf32>
    %83 = arith.truncf %82 : vector<1x16x16xf32> to vector<1x16x16xbf16>
    "tpu.trace_start"() <{level = 10 : i32, message = "bts,bse->bte"}> : () -> ()
    %cst_24 = arith.constant dense<0.000000e+00> : vector<1x16x32xf32>
    %84 = tpu.matmul %83, %69, %cst_24 {dimension_numbers = #tpu.dot_dimension_numbers<[2], [1], [1], [2], [0, 0, 0, 1, 1, 2], [0], [0]>} : vector<1x16x16xbf16>, vector<1x16x32xbf16>, vector<1x16x32xf32> -> vector<1x16x32xf32>
    "tpu.trace_stop"() : () -> ()
    %85 = arith.truncf %84 : vector<1x16x32xf32> to vector<1x16x32xbf16>
    %86 = vector.extract_strided_slice %25 {offsets = [0, 0, 96], sizes = [1, 16, 32], strides = [1, 1, 1]} : vector<1x16x128xbf16> to vector<1x16x32xbf16>
    %87 = vector.extract_strided_slice %27 {offsets = [0, 0, 96], sizes = [1, 16, 32], strides = [1, 1, 1]} : vector<1x16x128xbf16> to vector<1x16x32xbf16>
    %88 = vector.extract_strided_slice %28 {offsets = [0, 0, 96], sizes = [1, 16, 32], strides = [1, 1, 1]} : vector<1x16x128xbf16> to vector<1x16x32xbf16>
    "tpu.trace_start"() <{level = 10 : i32, message = "bte,bse->bts"}> : () -> ()
    %cst_25 = arith.constant dense<0.000000e+00> : vector<1x16x16xf32>
    %89 = tpu.matmul %86, %87, %cst_25 {dimension_numbers = #tpu.dot_dimension_numbers<[2], [2], [1], [1], [0, 0, 0, 1, 1, 1], [0], [0]>} : vector<1x16x32xbf16>, vector<1x16x32xbf16>, vector<1x16x16xf32> -> vector<1x16x16xf32>
    "tpu.trace_stop"() : () -> ()
    %90 = vector.shape_cast %6 : vector<16x16xf32> to vector<1x16x16xf32>
    %91 = arith.addf %89, %90 : vector<1x16x16xf32>
    %cst_26 = arith.constant dense<0xFF800000> : vector<1x16xf32>
    %92 = vector.multi_reduction <maximumf>, %91, %cst_26 [2] : vector<1x16x16xf32> to vector<1x16xf32>
    %93 = vector.shape_cast %92 : vector<1x16xf32> to vector<1x16x1xf32>
    %94 = vector.broadcast %93 : vector<1x16x1xf32> to vector<1x16x16xf32>
    %95 = arith.subf %91, %94 : vector<1x16x16xf32>
    %96 = math.exp %95 : vector<1x16x16xf32>
    %cst_27 = arith.constant dense<0.000000e+00> : vector<1x16xf32>
    %97 = vector.multi_reduction <add>, %96, %cst_27 [2] : vector<1x16x16xf32> to vector<1x16xf32>
    %98 = vector.shape_cast %97 : vector<1x16xf32> to vector<1x16x1xf32>
    %99 = tpu.reciprocal %98 {approx = true} : vector<1x16x1xf32> -> vector<1x16x1xf32>
    %100 = vector.broadcast %99 : vector<1x16x1xf32> to vector<1x16x16xf32>
    %101 = arith.mulf %96, %100 : vector<1x16x16xf32>
    %102 = arith.truncf %101 : vector<1x16x16xf32> to vector<1x16x16xbf16>
    "tpu.trace_start"() <{level = 10 : i32, message = "bts,bse->bte"}> : () -> ()
    %cst_28 = arith.constant dense<0.000000e+00> : vector<1x16x32xf32>
    %103 = tpu.matmul %102, %88, %cst_28 {dimension_numbers = #tpu.dot_dimension_numbers<[2], [1], [1], [2], [0, 0, 0, 1, 1, 2], [0], [0]>} : vector<1x16x16xbf16>, vector<1x16x32xbf16>, vector<1x16x32xf32> -> vector<1x16x32xf32>
    "tpu.trace_stop"() : () -> ()
    %104 = arith.truncf %103 : vector<1x16x32xf32> to vector<1x16x32xbf16>
    %105 = tpu.concatenate %47, %66, %85, %104 in 2 : vector<1x16x32xbf16>, vector<1x16x32xbf16>, vector<1x16x32xbf16>, vector<1x16x32xbf16> -> vector<1x16x128xbf16>
    %c0_29 = arith.constant 0 : index
    %c0_30 = arith.constant 0 : index
    %106 = vector.load %arg6[%c0_29, %c0_30] : memref<128x32xbf16, #tpu.memory_space<vmem>>, vector<128x32xbf16>
    "tpu.trace_start"() <{level = 10 : i32, message = "btf,fe->bte"}> : () -> ()
    %cst_31 = arith.constant dense<0.000000e+00> : vector<1x16x32xf32>
    %107 = tpu.matmul %105, %106, %cst_31 {dimension_numbers = #tpu.dot_dimension_numbers<[2], [0], [0, 1], [1], [0, 0, 0, 1, 1, 1], [], []>} : vector<1x16x128xbf16>, vector<128x32xbf16>, vector<1x16x32xf32> -> vector<1x16x32xf32>
    "tpu.trace_stop"() : () -> ()
    %c0_32 = arith.constant 0 : index
    %c0_33 = arith.constant 0 : index
    %108 = vector.load %arg7[%c0_32, %c0_33] : memref<1x32xf32, #tpu.memory_space<vmem>>, vector<1x32xf32>
    %109 = vector.shape_cast %108 : vector<1x32xf32> to vector<1x1x32xf32>
    %110 = vector.broadcast %109 : vector<1x1x32xf32> to vector<1x16x32xf32>
    %111 = arith.addf %107, %110 : vector<1x16x32xf32>
    %c0_34 = arith.constant 0 : index
    %c0_35 = arith.constant 0 : index
    %c0_36 = arith.constant 0 : index
    %112 = vector.load %arg8[%c0_34, %c0_35, %c0_36] : memref<1x16x32xf32, #tpu.memory_space<vmem>>, vector<1x16x32xf32>
    tpu.vector_store %arg8[%c0_34, %c0_35, %c0_36], %111 {strides = array<i32>} : memref<1x16x32xf32, #tpu.memory_space<vmem>>, vector<1x16x32xf32>,
    return
  }
  func.func @transform_0(%arg0: i32) -> (i32, i32, i32) {
    %c0_i32 = arith.constant 0 : i32
    %c0_i32_0 = arith.constant 0 : i32
    %c0_i32_1 = arith.constant 0 : i32
    return %arg0, %c0_i32, %c0_i32_0 : i32, i32, i32
  }
  func.func @transform_1(%arg0: i32) -> (i32, i32) {
    %c0_i32 = arith.constant 0 : i32
    %c0_i32_0 = arith.constant 0 : i32
    %c0_i32_1 = arith.constant 0 : i32
    return %c0_i32, %c0_i32_0 : i32, i32
  }
  func.func @transform_2(%arg0: i32) -> (i32, i32) {
    %c0_i32 = arith.constant 0 : i32
    %c0_i32_0 = arith.constant 0 : i32
    %c0_i32_1 = arith.constant 0 : i32
    return %c0_i32, %c0_i32_0 : i32, i32
  }
  func.func @transform_3(%arg0: i32) -> (i32, i32) {
    %c0_i32 = arith.constant 0 : i32
    %c0_i32_0 = arith.constant 0 : i32
    %c0_i32_1 = arith.constant 0 : i32
    return %c0_i32, %c0_i32_0 : i32, i32
  }
  func.func @transform_4(%arg0: i32) -> (i32, i32) {
    %c0_i32 = arith.constant 0 : i32
    %c0_i32_0 = arith.constant 0 : i32
    %c0_i32_1 = arith.constant 0 : i32
    return %c0_i32, %c0_i32_0 : i32, i32
  }
  func.func @transform_5(%arg0: i32) -> (i32, i32) {
    %c0_i32 = arith.constant 0 : i32
    %c0_i32_0 = arith.constant 0 : i32
    %c0_i32_1 = arith.constant 0 : i32
    return %c0_i32, %c0_i32_0 : i32, i32
  }
  func.func @transform_6(%arg0: i32) -> (i32, i32) {
    %c0_i32 = arith.constant 0 : i32
    %c0_i32_0 = arith.constant 0 : i32
    %c0_i32_1 = arith.constant 0 : i32
    return %c0_i32, %c0_i32_0 : i32, i32
  }
  func.func @transform_7(%arg0: i32) -> (i32, i32, i32) {
    %c0_i32 = arith.constant 0 : i32
    %c0_i32_0 = arith.constant 0 : i32
    %c0_i32_1 = arith.constant 0 : i32
    return %arg0, %c0_i32, %c0_i32_0 : i32, i32, i32
  }
}

</mosaic_0001>

<bundles_post_ra>
// kernel: tpu_custom_call.1
= control target key start
LH: loop header
LB: loop body
LE: loop exit
PB: predicated region body
PF: predicated region fallthrough
CT: control target
= control target key end

     0   :  { %12 = vsyncpa [#allocation3], 0  ;;  %s1875_s0 = inlined_call_operand.vmem [shape: bf16[2,18,32], index: 0, kind: input, shape index: {}]   ;;  %s1876_s1 = inlined_call_operand.vmem [shape: bf16[32,128], index: 1, kind: input, shape index: {}]   ;;  %s1877_s2 = inlined_call_operand.vmem [shape: f32[1,128], index: 2, kind: input, shape index: {}]   ;;  %s1878_s3 = inlined_call_operand.vmem [shape: bf16[96,256], index: 3, kind: input, shape index: {}]   ;;  %s1879_s4 = inlined_call_operand.vmem [shape: f32[1,256], index: 4, kind: input, shape index: {}]   ;;  %s1880_s5 = inlined_call_operand.vmem [shape: bf16[128,32], index: 5, kind: input, shape index: {}]   ;;  %s1881_s6 = inlined_call_operand.vmem [shape: f32[1,32], index: 6, kind: input, shape index: {}]   ;;  %s1882_s7 = inlined_call_operand.hbm [shape: f32[2,16,32], index: 7, kind: output, shape index: {}]  }
   0x1   :  { %14 = vsyncpa [#allocation3 + $0x1], 0  ;;  %s1594_s24 = smov 0   ;;  %s1596_s25 = smov 0  }
   0x2   :  { %s1598_s26 = smov 0   ;;  %s1600_s27 = smov 0  }
   0x3 LB: > { %s1615_s28 = sadd.s32 4294967295, %s1542_s27   ;;  %s1217_s29 = sadd.s32 4294967294, %s1542_s27   ;;  %s1542_s27 = sphi %s1600_s27, %s1888_s27   ;;  %s1538_s26 = sphi %s1598_s26, %s1887_s26   ;;  %s1534_s25 = sphi %s1596_s25, %s1886_s25   ;;  %s1530_s24 = sphi %s1594_s24, %s1885_s24  }
   0x4   : > { %s1619_s30 = sadd.s32 1, %s1542_s27   ;;  %s179_s8 = sadd.s32 1, %s1538_s26 }
   0x5   : > { %s176_s9 = ssub.s32 %s1542_s27, %s1619_s30  ;;  %p189_p0 = scmp.ne.s32.totalorder %s1538_s26, %s1534_s25 }
   0x6   : > { %p177_p1 = scmp.eq.s32.totalorder %s176_s9, 0  ;;  %p190_p2 = scmp.eq.s32.totalorder %s1615_s28, 1 }
   0x7   : > { %p195_p3 = scmp.ne.s32.totalorder %s1534_s25, %s1530_s24  ;;  %p196_p4 = scmp.eq.s32.totalorder %s1217_s29, 1 }
   0x8   : > { %s1630_s10 = scalar_select %p177_p1, %s1538_s26, %s179_s8  }
   0x9   : > { %p1632_p5 = por %p190_p2, %p189_p0  ;;  %p1636_p6 = por %p196_p4, %p195_p3 }
   0xa   : > { %p1220_p7 = scmp.ge.s32.totalorder %s1542_s27, 1  ;;  %p240_p8 = scmp.lt.s32.totalorder %s1542_s27, 3 }
   0xc   : > { %p241_p9 = pnand %p1220_p7, %p240_p8 }
   0xd   : > { %p272_p10 = scmp.lt.s32.totalorder (!%p241_p9), %s1615_s28, 1  ;;  %v1420_v0 = vld [vmem:[%s1878_s3 + $0x4] ss:$8 sps:$4 sm:$0xff] (!%p241_p9)   ;;  %v1422_v1 = vld [vmem:[%s1878_s3] ss:$8 sps:$4 sm:$0xff] (!%p241_p9)   ;;  %vm313_vm1 = vcmask (!%p241_p9), 1046528   ;;  %v281_v32 = vlaneseq (!%p241_p9) }
   0xe   : > { %244 = sbr.rel (%p241_p9) target bundleno = 1609 (0x649), region = 48  ;;  %v1423_v2 = vld [vmem:[%s1878_s3 + $0x14] ss:$8 sps:$4 sm:$0xff] (!%p241_p9)   ;;  %412 = vmatprep.subr.bf16.mxu1 (!%p241_p9), %v1420_v0  ;;  %v1425_v3 = vld [vmem:[%s1878_s3 + $0x10] ss:$8 sps:$4 sm:$0xff] (!%p241_p9)   ;;  %v1544_v12 = vmov (!%p241_p9), 0  }
   0xf   : > { %413 = vmatpush1.bf16.msra.mxu1 (!%p241_p9), %v1422_v1  ;;  %v1426_v4 = vld [vmem:[%s1878_s3 + $0x24] ss:$8 sps:$4 sm:$0xff] (!%p241_p9)   ;;  %vm298_vm0 = vsmask.f32 (!%p241_p9), 7424  ;;  %v1428_v7 = vld [vmem:[%s1878_s3 + $0x20] ss:$8 sps:$4 sm:$0xff] (!%p241_p9)   ;;  %444 = vmatprep.mubr.bf16.mxu1 (!%p241_p9), %v1544_v12 }
  0x10   : > { %414 = vmatprep.subr.bf16.mxu1 (!%p241_p9), %v1423_v2  ;;  %v1429_v8 = vld [vmem:[%s1878_s3 + $0x34] ss:$8 sps:$4 sm:$0xff] (!%p241_p9)   ;;  %v1431_v13 = vld [vmem:[%s1878_s3 + $0x30] ss:$8 sps:$4 sm:$0xff] (!%p241_p9)   ;;  %v1432_v14 = vld [vmem:[%s1878_s3 + $0x44] ss:$8 sps:$4 sm:$0xff] (!%p241_p9)  }
  0x11   : > { %v1434_v20 = vld [vmem:[%s1878_s3 + $0x40] ss:$8 sps:$4 sm:$0xff] (!%p241_p9)   ;;  %v1435_v21 = vld [vmem:[%s1878_s3 + $0x54] ss:$8 sps:$4 sm:$0xff] (!%p241_p9)   ;;  %s1545_s9 = smov (!%p241_p9), 32   ;;  %s1546_s15 = smov (!%p241_p9), 64  }
  0x12   : > { %v1437_v24 = vld [vmem:[%s1878_s3 + $0x50] ss:$8 sps:$4 sm:$0xff] (!%p241_p9)   ;;  %vm319_vm2 = vcmask (!%p241_p9), 261120   ;;  %vm322_vm3 = vcmask (!%p241_p9), 523264   ;;  %vm409_vm4 = vcmask (!%p241_p9), 785408   ;;  %v1547_v29 = vmov (!%p241_p9), 0.0  }
  0x13   : > { %415 = vmatpush1.bf16.msra.mxu1 (!%p241_p9), %v1425_v3  ;;  %1293 = vmatprep.subr.bf16.mxu0 (!%p241_p9), %v1547_v29  ;;  %vm1548_vm5 = vmmov (!%p241_p9), 0   ;;  %v1438_v30 = vld [vmem:[%s1876_s1] sm:$0xff] (!%p241_p9)   ;;  %v1439_v31 = vld [vmem:[%s1876_s1 + $0x8] sm:$0xff] (!%p241_p9)   ;;  %v1707_v33 = vshrl.u32 (!%p241_p9), %v281_v32, 7  ;;  %s1549_s22 = smov (!%p241_p9), 96   ;;  %v285_v3 = vand.u32 (!%p241_p9), 127, %v281_v32 }
  0x14   : > { %416 = vmatprep.subr.bf16.mxu1 (!%p241_p9), %v1426_v4  ;;  %1297 = vmatprep.mubr.msk.bf16.mxu0 (!%p241_p9), %vm1548_vm5, %v1547_v29  ;;  %v337_v35 = vld [vmem:[%s1879_s4] sm:$0x3] (!%p241_p9)  ;;  %vm572_vm8 = vcmask (!%p241_p9), 130048   ;;  %s1551_s14 = smov (!%p241_p9), [#allocation2]  }
  0x15   : > { %s273_s17 = scalar_select %p272_p10, %s1615_s28, 1  ;;  %1294 = vmatpush3.bf16.msra.mxu0 %v1438_v30  ;;  %v341_v34 = vsub.s32 0, %v1707_v33  ;;  %v345_v36 = vsub.s32 1, %v1707_v33  ;;  %v1238_v50 = vld [vmem:[%s1877_s2] ss:$0 sm:$0xff]  ;;  %v283_v4 = vadd.s32 8, %v1707_v33  ;;  %vm286_vm6 = vcmp.le.s32.totalorder %v285_v3, %v1707_v33 }
  0x16   : > { %1295 = vmatprep.subr.bf16.mxu0 %v1547_v29  ;;  %s1484_s16 = sshll.u32 %s1551_s14, 4  ;;  %s1485_s16 = int_to_ptr.vmem [resolvable:$false] %s1484_s16 }
  0x17   : > { %s1369_s20 = smul.u32 12, %s273_s17  ;;  %417 = vmatpush1.bf16.msra.mxu1 %v1428_v7  ;;  %v342_v37 = vrot.slane %v337_v35, %v341_v34  ;;  %v346_v39 = vrot.slane %v337_v35, %v345_v36  ;;  %vm287_vm7 = vcmp.le.s32.totalorder %v285_v3, %v283_v4  ;;  %s1486_s17 = scalar_lea.vmem %s1485_s16, 512 }
  0x18   : > { %418 = vmatprep.subr.bf16.mxu1 %v1429_v8 }
  0x19   : > { %s276_s13 = scalar_lea.vmem %s1875_s0, %s1369_s20  ;;  %1296 = vmatpush3.bf16.msra.mxu0 %v1439_v31 }
  0x1a   : > { %v1418_v5 = vld [vmem:[%s276_s13] sm:$0xff]   ;;  %v1419_v6 = vld [vmem:[%s276_s13 + $0x8] ss:$0 sps:$4 sm:$0x11]   ;;  %1313 = vmatprep.subr.bf16.mxu0 %v1547_v29 }
  0x1b   : > { %v300_v9 = vshrl.u32 %v1418_v5, 16  ;;  %v302_v10 = vshll.u32 %v1418_v5, 16  ;;  %v307_v11 = vshll.u32 %v1419_v6, 16  ;;  %v314_v17 = vrot.slane %v1418_v5, 1  ;;  %419 = vmatpush1.bf16.msra.mxu1 %v1431_v13 }
  0x1c   : > { %v315_v18 = vrot.slane %v1419_v6, 1  ;;  %420 = vmatprep.subr.bf16.mxu1 %v1432_v14 }
  0x1d   : > { %v304_v15 = vrot.slane %v302_v10, 1  ;;  %v309_v16 = vrot.slane %v307_v11, 1 }
  0x1e   : > { %v316_v23 = vsel %vm313_vm1, %v314_v17, %v315_v18 }
  0x1f   : > { %v305_v19 = vor.u32 %v304_v15, %v300_v9  ;;  %421 = vmatpush1.bf16.msra.mxu1 %v1434_v20  ;;  %1298 = vmatmul.mubr.msk.bf16.vlgmr.msra.gmra.mrb[0].mxu0 %vm319_vm2, %v316_v23 }
  0x20   : > { %422 = vmatprep.subr.bf16.mxu1 %v1435_v21  ;;  %1315 = vmatprep.mubr.msk.bf16.mxu0 %vm1548_vm5, %v1547_v29 }
  0x21   : > { %v310_v22 = vsel %vm298_vm0, %v305_v19, %v309_v16 }
  0x22   : > { %311 = vrot.lane.b32.xlu0 %v310_v22, %s1545_s9 }
  0x23   : > { %423 = vmatpush1.bf16.msra.mxu1 %v1437_v24 }
  0x24   : > { %1301 = vmatprep.subr.bf16.mxu1 %v1547_v29 }
  0x26   : > { %317 = vrot.lane.b32.xlu0 %v316_v23, %s1546_s15 }
  0x94   : > { %v312_v25 = vpop.permute.xlu0 %311 }
  0x95   : > { %v321_v26 = vsel %vm319_vm2, %v1418_v5, %v312_v25  ;;  %v1550_v5 = vmov -1e+09  }
  0x96   : > { %v288_v6 = vsel %vm286_vm6, 0.0, %v1550_v5  ;;  %v289_v8 = vsel %vm287_vm7, 0.0, %v1550_v5 }
  0x98   : > { %v318_v27 = vpop.permute.xlu0 %317 }
  0x99   : > { %v324_v28 = vsel %vm322_vm3, %v321_v26, %v318_v27 }
  0x9a   : > { %1237 = vmatmul.mubr.msk.bf16.vlgmr.msra.gmra.mrb[0].mxu1 %vm409_vm4, %v324_v28 }
  0x9b   : > { %1303 = vmatprep.mubr.msk.bf16.mxu1 %vm1548_vm5, %v1547_v29 }
  0xf2   : > { %v515_v51 = vpop.f32.mrb[0].mxu0 }
  0xf3   : > { %v516_v52 = vadd.f32 %v1238_v50, %v515_v51  ;;  %v1299_v53 = vpop.f32.mrb[1].mxu0 }
  0xf4   : > { %v518_v54 = vpop.f32.mrb[2].mxu0 }
  0xf5   : > { %v519_v55 = vadd.f32 %v1238_v50, %v518_v54  ;;  %v1300_v56 = vpop.f32.mrb[3].mxu0 }
  0xf7   : > { %v1728_v57 = vpack.c.bf16 %v519_v55, %v516_v52 }
 0x16d   : > { %v446_v38 = vpop.f32.mrb[0].mxu1 }
 0x16e   : > { %v448_v40 = vpop.f32.mrb[1].mxu1  ;;  %v447_v42 = vadd.f32 %v446_v38, %v342_v37 }
 0x16f   : > { %v450_v41 = vpop.f32.mrb[2].mxu1  ;;  %v449_v45 = vadd.f32 %v448_v40, %v346_v39 }
 0x170   : > { %v451_v43 = vadd.f32 %v450_v41, %v342_v37  ;;  %v452_v44 = vpop.f32.mrb[3].mxu1 }
 0x171   : > { %v453_v46 = vadd.f32 %v452_v44, %v346_v39 }
 0x172   : > { %v522_v47 = vpack.c.bf16 %v451_v43, %v447_v42 }
 0x173   : > { %v523_v48 = vpack.c.bf16 %v453_v46, %v449_v45 }
 0x175   : > { %768 = vrot.lane.b32.xlu0 %v523_v48, %s1546_s15  ;;  %645 = vrot.lane.b32.xlu1 %v523_v48, %s1549_s22  ;;  %v529_v49 = vsel %vm319_vm2, %v523_v48, 0 }
 0x176   : > { %1302 = vmatpush3.bf16.xpose.msra.mxu1 %v529_v49 }
 0x177   : > { %1307 = vmatprep.subr.bf16.mxu1 %v1547_v29 }
 0x179   : > { %890 = vrot.lane.b32.xlu0 %v523_v48, %s1545_s9  ;;  %642 = vrot.lane.b32.xlu1 %v522_v47, %s1549_s22 }
 0x17d   : > { %766 = vrot.lane.b32.xlu1 %v522_v47, %s1546_s15  ;;  %1304 = vmatmul.mubr.msk.bf16.vlgmr.msra.gmra.mrb[4].mxu1 %vm319_vm2, %v522_v47 }
 0x17e   : > { %1309 = vmatprep.mubr.msk.bf16.mxu1 %vm1548_vm5, %v1547_v29  ;;  %1308 = vmatpush3.bf16.msra.mxu1 %v1728_v57 }
 0x17f   : > { %1319 = vmatprep.subr.bf16.mxu1 %v1547_v29 }
 0x181   : > { %888 = vrot.lane.b32.xlu1 %v522_v47, %s1545_s9 }
 0x1e7   : > { %v646_v58 = vpop.permute.xlu1 %645  ;;  %v769_v60 = vpop.permute.xlu0 %768 }
 0x1e8   : > { %v651_v59 = vsel %vm319_vm2, %v646_v58, 0  ;;  %v774_v62 = vsel %vm319_vm2, %v769_v60, 0 }
 0x1e9   : > { %1314 = vmatpush3.bf16.xpose.msra.mxu0 %v651_v59 }
 0x1ea   : > { %1325 = vmatprep.subr.bf16.mxu0 %v1547_v29 }
 0x1eb   : > { %v643_v61 = vpop.permute.xlu1 %642  ;;  %v891_v63 = vpop.permute.xlu0 %890 }
 0x1ec   : > { %v896_v1 = vsel %vm319_vm2, %v891_v63, 0 }
 0x1ef   : > { %v767_v0 = vpop.permute.xlu1 %766 }
 0x1f0   : > { %1316 = vmatmul.mubr.msk.bf16.vlgmr.msra.gmra.mrb[4].mxu0 %vm319_vm2, %v643_v61 }
 0x1f1   : > { %1326 = vmatpush3.bf16.xpose.msra.mxu0 %v774_v62  ;;  %1327 = vmatprep.mubr.msk.bf16.mxu0 %vm1548_vm5, %v1547_v29 }
 0x1f2   : > { %1337 = vmatprep.subr.bf16.mxu0 %v1547_v29 }
 0x1f3   : > { %v889_v2 = vpop.permute.xlu1 %888 }
 0x1f8   : > { %1328 = vmatmul.mubr.msk.bf16.vlgmr.msra.gmra.mrb[8].mxu0 %vm319_vm2, %v767_v0 }
 0x1f9   : > { %1338 = vmatpush3.bf16.xpose.msra.mxu0 %v896_v1  ;;  %1339 = vmatprep.mubr.msk.bf16.mxu0 %vm1548_vm5, %v1547_v29 }
 0x1fa   : > { %1349 = vmatprep.subr.bf16.mxu0 %v1547_v29 }
 0x200   : > { %1340 = vmatmul.mubr.msk.bf16.vlgmr.msra.gmra.mrb[12].mxu0 %vm319_vm2, %v889_v2 }
 0x201   : > { %1365 = vmatprep.mubr.msk.bf16.mxu0 %vm1548_vm5, %v1547_v29 }
 0x250   : > { %v565_v7 = vpop.f32.mrb[4].mxu1 }
 0x251   : > { %v566_v9 = vadd.f32 %v565_v7, %v288_v6  ;;  %v1305_v10 = vpop.f32.mrb[5].mxu1 }
 0x252   : > { %v568_v11 = vpop.f32.mrb[6].mxu1 }
 0x253   : > { %v569_v12 = vadd.f32 %v568_v11, %v289_v8  ;;  %v1306_v13 = vpop.f32.mrb[7].mxu1  ;;  %v573_v14 = vsel %vm572_vm8, %v566_v9, -inf }
 0x254   : > { %574 = vmax.xlane.f32.xlu0 %v573_v14 }
 0x255   : > { %v576_v15 = vsel %vm572_vm8, %v569_v12, -inf }
 0x256   : > { %577 = vmax.xlane.f32.xlu1 %v576_v15 }
 0x2c3   : > { %v687_v16 = vpop.f32.mrb[4].mxu0 }
 0x2c4   : > { %v688_v17 = vadd.f32 %v687_v16, %v288_v6  ;;  %v1317_v18 = vpop.f32.mrb[5].mxu0 }
 0x2c5   : > { %v690_v19 = vpop.f32.mrb[6].mxu0 }
 0x2c6   : > { %v691_v20 = vadd.f32 %v690_v19, %v289_v8  ;;  %v1318_v21 = vpop.f32.mrb[7].mxu0  ;;  %v694_v22 = vsel %vm572_vm8, %v688_v17, -inf }
 0x2c7   : > { %695 = vmax.xlane.f32.xlu0 %v694_v22 }
 0x2c8   : > { %v697_v23 = vsel %vm572_vm8, %v691_v20, -inf }
 0x2cb   : > { %v810_v24 = vpop.f32.mrb[8].mxu0  ;;  %698 = vmax.xlane.f32.xlu0 %v697_v23 }
 0x2cc   : > { %v811_v25 = vadd.f32 %v810_v24, %v288_v6  ;;  %v1329_v26 = vpop.f32.mrb[9].mxu0 }
 0x2cd   : > { %v813_v27 = vpop.f32.mrb[10].mxu0 }
 0x2ce   : > { %v814_v28 = vadd.f32 %v813_v27, %v289_v8  ;;  %v1330_v30 = vpop.f32.mrb[11].mxu0  ;;  %v817_v31 = vsel %vm572_vm8, %v811_v25, -inf }
 0x2cf   : > { %818 = vmax.xlane.f32.xlu1 %v817_v31 }
 0x2d0   : > { %v820_v32 = vsel %vm572_vm8, %v814_v28, -inf }
 0x2d1   : > { %821 = vmax.xlane.f32.xlu0 %v820_v32 }
 0x2d3   : > { %v932_v33 = vpop.f32.mrb[12].mxu0 }
 0x2d4   : > { %v933_v34 = vadd.f32 %v932_v33, %v288_v6  ;;  %v1341_v35 = vpop.f32.mrb[13].mxu0 }
 0x2d5   : > { %v935_v36 = vpop.f32.mrb[14].mxu0 }
 0x2d6   : > { %v936_v37 = vadd.f32 %v935_v36, %v289_v8  ;;  %v1342_v38 = vpop.f32.mrb[15].mxu0  ;;  %v939_v39 = vsel %vm572_vm8, %v933_v34, -inf }
 0x2d7   : > { %940 = vmax.xlane.f32.xlu1 %v939_v39 }
 0x2d8   : > { %v942_v40 = vsel %vm572_vm8, %v936_v37, -inf }
 0x2d9   : > { %943 = vmax.xlane.f32.xlu0 %v942_v40 }
 0x2e1   : > { %v575_v41 = vpop.xlane.xlu0 %574 }
 0x2e2   : > { %v579_v42 = vsub.f32 %v566_v9, %v575_v41 }
 0x2e3   : > { %v578_v43 = vpop.xlane.xlu1 %577 }
 0x2e4   : > { %v581_v44 = vmul.f32 1.442695, %v579_v42  ;;  %v580_v45 = vsub.f32 %v569_v12, %v578_v43 }
 0x2e6   : > { %1448 = vpow2.f32 %v581_v44  ;;  %v583_v46 = vmul.f32 1.442695, %v580_v45 }
 0x2e8   : > { %1450 = vpow2.f32 %v583_v46 }
 0x2f0   : > { %v1449_v47 = vpop.eup %1448 }
 0x2f1   : > { %v585_v48 = vsel %vm572_vm8, %v1449_v47, 0.0 }
 0x2f2   : > { %v1451_v49 = vpop.eup %1450  ;;  %586 = vadd.xlane.f32.xlu1 %v585_v48 }
 0x2f3   : > { %v588_v50 = vsel %vm572_vm8, %v1451_v49, 0.0 }
 0x2f4   : > { %589 = vadd.xlane.f32.xlu0 %v588_v50 }
 0x303   : > { %718 = vrot.lane.b32.xlu1 %v1728_v57, %s1549_s22 }
 0x354   : > { %v696_v51 = vpop.xlane.xlu0 %695 }
 0x355   : > { %v700_v52 = vsub.f32 %v688_v17, %v696_v51 }
 0x357   : > { %v702_v53 = vmul.f32 1.442695, %v700_v52 }
 0x358   : > { %v699_v54 = vpop.xlane.xlu0 %698 }
 0x359   : > { %1452 = vpow2.f32 %v702_v53  ;;  %v701_v55 = vsub.f32 %v691_v20, %v699_v54  ;;  %v1440_v54 = vld [vmem:[%s1880_s5] sm:$0xff]  }
 0x35a   : > { %1350 = vmatpush3.bf16.msra.mxu0 %v1440_v54 }
 0x35b   : > { %v704_v56 = vmul.f32 1.442695, %v701_v55  ;;  %v1441_v55 = vld [vmem:[%s1880_s5 + $0x8] sm:$0xff]   ;;  %1351 = vmatprep.subr.bf16.mxu0 %v1547_v29 }
 0x35c   : > { %v819_v58 = vpop.xlane.xlu1 %818 }
 0x35d   : > { %1454 = vpow2.f32 %v704_v56  ;;  %v823_v59 = vsub.f32 %v811_v25, %v819_v58  ;;  %v1442_v56 = vld [vmem:[%s1880_s5 + $0x10] sm:$0xff]   ;;  %v1443_v58 = vld [vmem:[%s1880_s5 + $0x18] sm:$0xff]  }
 0x35e   : > { %v822_v60 = vpop.xlane.xlu0 %821  ;;  %1352 = vmatpush3.bf16.msra.mxu0 %v1441_v55 }
 0x35f   : > { %v825_v61 = vmul.f32 1.442695, %v823_v59  ;;  %v824_v62 = vsub.f32 %v814_v28, %v822_v60  ;;  %1353 = vmatprep.subr.bf16.mxu0 %v1547_v29  ;;  %v1444_v59 = vld [vmem:[%s1880_s5 + $0x20] sm:$0xff]   ;;  %v1445_v60 = vld [vmem:[%s1880_s5 + $0x28] sm:$0xff]  }
 0x361   : > { %1456 = vpow2.f32 %v825_v61  ;;  %v827_v63 = vmul.f32 1.442695, %v824_v62  ;;  %v1446_v62 = vld [vmem:[%s1880_s5 + $0x30] sm:$0xff]  }
 0x362   : > { %1354 = vmatpush3.bf16.msra.mxu0 %v1442_v56 }
 0x363   : > { %v1453_v0 = vpop.eup %1452  ;;  %1458 = vpow2.f32 %v827_v63  ;;  %1355 = vmatprep.subr.bf16.mxu0 %v1547_v29 }
 0x364   : > { %v941_v1 = vpop.xlane.xlu1 %940  ;;  %v706_v2 = vsel %vm572_vm8, %v1453_v0, 0.0 }
 0x365   : > { %v945_v3 = vsub.f32 %v933_v34, %v941_v1  ;;  %707 = vadd.xlane.f32.xlu1 %v706_v2  ;;  %v1447_v1 = vld [vmem:[%s1880_s5 + $0x38] sm:$0xff]  }
 0x366   : > { %v944_v4 = vpop.xlane.xlu0 %943  ;;  %1356 = vmatpush3.bf16.msra.mxu0 %v1443_v58 }
 0x367   : > { %v1455_v5 = vpop.eup %1454  ;;  %v947_v6 = vmul.f32 1.442695, %v945_v3  ;;  %v946_v7 = vsub.f32 %v936_v37, %v944_v4  ;;  %1357 = vmatprep.subr.bf16.mxu0 %v1547_v29 }
 0x368   : > { %v709_v8 = vsel %vm572_vm8, %v1455_v5, 0.0 }
 0x369   : > { %1460 = vpow2.f32 %v947_v6  ;;  %v949_v9 = vmul.f32 1.442695, %v946_v7  ;;  %710 = vadd.xlane.f32.xlu0 %v709_v8 }
 0x36a   : > { %1358 = vmatpush3.bf16.msra.mxu0 %v1444_v59 }
 0x36b   : > { %v1457_v10 = vpop.eup %1456  ;;  %1462 = vpow2.f32 %v949_v9  ;;  %1359 = vmatprep.subr.bf16.mxu0 %v1547_v29 }
 0x36c   : > { %v829_v11 = vsel %vm572_vm8, %v1457_v10, 0.0 }
 0x36d   : > { %v1459_v12 = vpop.eup %1458  ;;  %830 = vadd.xlane.f32.xlu1 %v829_v11 }
 0x36e   : > { %v832_v13 = vsel %vm572_vm8, %v1459_v12, 0.0  ;;  %1360 = vmatpush3.bf16.msra.mxu0 %v1445_v60 }
 0x36f   : > { %833 = vadd.xlane.f32.xlu0 %v832_v13  ;;  %1361 = vmatprep.subr.bf16.mxu0 %v1547_v29 }
 0x372   : > { %1362 = vmatpush3.bf16.msra.mxu0 %v1446_v62 }
 0x373   : > { %v1461_v14 = vpop.eup %1460  ;;  %1363 = vmatprep.subr.bf16.mxu0 %v1547_v29 }
 0x374   : > { %v951_v15 = vsel %vm572_vm8, %v1461_v14, 0.0 }
 0x375   : > { %v1463_v16 = vpop.eup %1462  ;;  %952 = vadd.xlane.f32.xlu1 %v951_v15 }
 0x376   : > { %v954_v17 = vsel %vm572_vm8, %v1463_v16, 0.0  ;;  %1364 = vmatpush3.bf16.msra.mxu0 %v1447_v1 }
 0x377   : > { %955 = vadd.xlane.f32.xlu0 %v954_v17 }
 0x37f   : > { %v587_v18 = vpop.xlane.xlu1 %586 }
 0x380   : > { %1464 = vrcp.f32 %v587_v18 }
 0x381   : > { %v590_v19 = vpop.xlane.xlu0 %589 }
 0x382   : > { %1466 = vrcp.f32 %v590_v19  ;;  %v1250_v19 = vld [vmem:[%s1881_s6] ss:$0 sm:$0xff] }
 0x383   : > { %v719_v25 = vpop.permute.xlu1 %718 }
 0x386   : > { %962 = vrot.lane.b32.xlu1 %v1728_v57, %s1545_s9 }
 0x38a   : > { %v1465_v20 = vpop.eup %1464 }
 0x38b   : > { %v593_v22 = vmul.f32 %v1465_v20, %v1449_v47 }
 0x38c   : > { %v1467_v21 = vpop.eup %1466 }
 0x38d   : > { %v594_v23 = vmul.f32 %v1467_v21, %v1451_v49  ;;  %840 = vrot.lane.b32.xlu0 %v1728_v57, %s1546_s15 }
 0x38f   : > { %v595_v24 = vpack.c.bf16 %v594_v23, %v593_v22 }
 0x391   : > { %1310 = vmatmul.mubr.msk.bf16.vlgmr.msra.gmra.mrb[8].mxu1 %vm572_vm8, %v595_v24 }
 0x392   : > { %1320 = vmatpush3.bf16.msra.mxu1 %v719_v25  ;;  %1321 = vmatprep.mubr.msk.bf16.mxu1 %vm1548_vm5, %v1547_v29 }
 0x393   : > { %1331 = vmatprep.subr.bf16.mxu1 %v1547_v29 }
 0x3f2   : > { %v708_v26 = vpop.xlane.xlu1 %707 }
 0x3f3   : > { %1468 = vrcp.f32 %v708_v26 }
 0x3f6   : > { %v711_v27 = vpop.xlane.xlu0 %710 }
 0x3f7   : > { %1470 = vrcp.f32 %v711_v27 }
 0x3fa   : > { %v831_v28 = vpop.xlane.xlu1 %830 }
 0x3fb   : > { %1472 = vrcp.f32 %v831_v28 }
 0x3fc   : > { %v834_v30 = vpop.xlane.xlu0 %833 }
 0x3fd   : > { %1474 = vrcp.f32 %v834_v30  ;;  %v1469_v31 = vpop.eup %1468 }
 0x3fe   : > { %v714_v32 = vmul.f32 %v1469_v31, %v1453_v0 }
 0x401   : > { %v1471_v57 = vpop.eup %1470 }
 0x402   : > { %v715_v33 = vmul.f32 %v1471_v57, %v1455_v5  ;;  %v953_v34 = vpop.xlane.xlu1 %952 }
 0x403   : > { %1476 = vrcp.f32 %v953_v34 }
 0x404   : > { %v956_v35 = vpop.xlane.xlu0 %955  ;;  %v716_v36 = vpack.c.bf16 %v715_v33, %v714_v32 }
 0x405   : > { %1478 = vrcp.f32 %v956_v35  ;;  %v1473_v37 = vpop.eup %1472 }
 0x406   : > { %1322 = vmatmul.mubr.msk.bf16.vlgmr.msra.gmra.mrb[12].mxu1 %vm572_vm8, %v716_v36  ;;  %v837_v41 = vmul.f32 %v1473_v37, %v1457_v10  ;;  %v963_v44 = vpop.permute.xlu1 %962 }
 0x407   : > { %v1475_v38 = vpop.eup %1474  ;;  %1333 = vmatprep.mubr.msk.bf16.mxu1 %vm1548_vm5, %v1547_v29 }
 0x408   : > { %v838_v39 = vmul.f32 %v1475_v38, %v1459_v12  ;;  %v841_v40 = vpop.permute.xlu0 %840 }
 0x409   : > { %1332 = vmatpush3.bf16.msra.mxu1 %v841_v40 }
 0x40a   : > { %1343 = vmatprep.subr.bf16.mxu1 %v1547_v29  ;;  %v839_v42 = vpack.c.bf16 %v838_v39, %v837_v41 }
 0x40d   : > { %v1477_v43 = vpop.eup %1476 }
 0x40e   : > { %1334 = vmatmul.mubr.msk.bf16.vlgmr.msra.gmra.mrb[16].mxu1 %vm572_vm8, %v839_v42  ;;  %v959_v47 = vmul.f32 %v1477_v43, %v1461_v14 }
 0x40f   : > { %v1479_v45 = vpop.eup %1478  ;;  %1344 = vmatpush3.bf16.msra.mxu1 %v963_v44  ;;  %1345 = vmatprep.mubr.msk.bf16.mxu1 %vm1548_vm5, %v1547_v29 }
 0x410   : > { %v960_v46 = vmul.f32 %v1479_v45, %v1463_v16 }
 0x412   : > { %v961_v48 = vpack.c.bf16 %v960_v46, %v959_v47 }
 0x416   : > { %1346 = vmatmul.mubr.msk.bf16.vlgmr.msra.gmra.mrb[20].mxu1 %vm572_vm8, %v961_v48 }
 0x464   : > { %v633_v49 = vpop.f32.mrb[8].mxu1 }
 0x465   : > { %v1311_v50 = vpop.f32.mrb[9].mxu1 }
 0x466   : > { %v636_v51 = vpop.f32.mrb[10].mxu1 }
 0x467   : > { %v640_v52 = vpack.c.bf16 %v636_v51, %v633_v49  ;;  %v1312_v53 = vpop.f32.mrb[11].mxu1 }
 0x4d9   : > { %v758_v61 = vpop.f32.mrb[12].mxu1 }
 0x4da   : > { %v1323_v63 = vpop.f32.mrb[13].mxu1 }
 0x4db   : > { %v761_v0 = vpop.f32.mrb[14].mxu1 }
 0x4dc   : > { %v765_v2 = vpack.c.bf16 %v761_v0, %v758_v61  ;;  %v1324_v3 = vpop.f32.mrb[15].mxu1 }
 0x4de   : > { %1011 = vrot.lane.b32.xlu1 %v765_v2, %s1545_s9  ;;  %s269_s9 = sand.u32 1, %s1534_s25  }
 0x4e1   : > { %v880_v4 = vpop.f32.mrb[16].mxu1 }
 0x4e2   : > { %v1335_v5 = vpop.f32.mrb[17].mxu1 }
 0x4e3   : > { %v883_v6 = vpop.f32.mrb[18].mxu1 }
 0x4e4   : > { %v887_v7 = vpack.c.bf16 %v883_v6, %v880_v4  ;;  %v1336_v8 = vpop.f32.mrb[19].mxu1 }
 0x4e6   : > { %1014 = vrot.lane.b32.xlu0 %v887_v7, %s1546_s15  ;;  %s1221_s15 = sshll.u32 %s269_s9, 4 }
 0x4e7   : > { %s271_s20 = scalar_lea.vmem [#allocation2], %s1221_s15 }
 0x4e8   : > { %s1155_s21 = sshll.u32 %s271_s20, 4  ;;  %s1825_s21 = int_to_ptr.vmem [resolvable:$true] %s1155_s21 }
 0x4e9   : > { %v1002_v9 = vpop.f32.mrb[20].mxu1  ;;  %s1480_s13 = scalar_lea.vmem %s1825_s21, 256  ;;  %p1487_p0 = scmp.lt.s32.totalorder %s1825_s21, %s1485_s16 }
 0x4ea   : > { %v1347_v10 = vpop.f32.mrb[21].mxu1  ;;  %p1481_p11 = scmp.ne.s32.totalorder %s1825_s21, %s1480_s13  ;;  %p1488_p1 = scmp.lt.s32.totalorder %s1486_s17, %s1480_s13 }
 0x4eb   : > { %v1005_v11 = vpop.f32.mrb[22].mxu1 }
 0x4ec   : > { %v1009_v12 = vpack.c.bf16 %v1005_v11, %v1002_v9  ;;  %v1348_v13 = vpop.f32.mrb[23].mxu1  ;;  %p1482_p12 = pnand %p1481_p11, %p1632_p5  ;;  %p1489_p2 = por %p1488_p1, %p1487_p0 }
 0x4ee   : > { %1017 = vrot.lane.b32.xlu1 %v1009_v12, %s1549_s22  ;;  %s1264_s22 = sshll.u32 %s1615_s28, 8  ;;  %s1834_s28 = scalar_lea.sflag [#allocation3], %s269_s9 }
 0x4ef   : > { %s1831_s8 = scalar_lea.hbm %s1882_s7, %s1264_s22  ;;  %p1483_p13 = pneg %p1482_p12 }
 0x4f1   : > { %p1490_p3 = pnand %p1489_p2, %p1483_p13 }
 0x550   : > { %v1012_v29 = vpop.permute.xlu1 %1011 }
 0x551   : > { %v1021_v15 = vsel %vm319_vm2, %v640_v52, %v1012_v29 }
 0x558   : > { %v1015_v14 = vpop.permute.xlu0 %1014 }
 0x559   : > { %v1023_v16 = vsel %vm322_vm3, %v1021_v15, %v1015_v14 }
 0x560   : > { %v1018_v17 = vpop.permute.xlu1 %1017 }
 0x561   : > { %v1025_v18 = vsel %vm409_vm4, %v1023_v16, %v1018_v17 }
 0x562   : > { %1366 = vmatmul.mubr.bf16.vlgmr.msra.gmra.mrb[16].mxu0 %v1025_v18 }
 0x635   : > { %v1132_v20 = vpop.f32.mrb[16].mxu0 }
 0x636   : > { %v1133_v21 = vadd.f32 %v1250_v19, %v1132_v20  ;;  %v1367_v22 = vpop.f32.mrb[17].mxu0 }
 0x637   : > { %v1135_v23 = vpop.f32.mrb[18].mxu0 }
 0x638   : > { %1139 = vst.msk [vmem:[%s271_s20] sm:$0xff] %vm319_vm2, %v1133_v21  ;;  %v1136_v24 = vadd.f32 %v1250_v19, %v1135_v23  ;;  %v1368_v25 = vpop.f32.mrb[19].mxu0 }
 0x63a   : > { %1140 = vst.msk [vmem:[%s271_s20 + $0x8] sm:$0xff] %vm319_vm2, %v1136_v24 }
 0x63b   : > { %1493 = shalt.err (!%p1490_p3)
}
 0x63c   : > { %s1494_s9 = scalar_lea.hbm %s1831_s8, 256  ;;  %s1498_s19 = scalar_lea.hbm %s1882_s7, 512 }
 0x63d   : > { %p1495_p4 = scmp.ne.s32.totalorder %s1831_s8, %s1494_s9  ;;  %p1499_p9 = scmp.lt.u32.totalorder %s1831_s8, %s1882_s7 }
 0x63e   : > { %p1500_p10 = scmp.lt.u32.totalorder %s1498_s19, %s1494_s9  ;;  %p1502_p12 = scmp.lt.u32.totalorder %s1494_s9, %s1831_s8 }
 0x63f   : > { %p1496_p7 = pnand %p1495_p4, %p1632_p5 }
 0x640   : > { %p1501_p11 = por %p1500_p10, %p1499_p9 }
 0x641   : > { %p1497_p8 = pneg %p1496_p7 }
 0x642   : > { %p1503_p13 = por %p1502_p12, %p1501_p11 }
 0x644   : > { %p1504_p0 = pnand %p1503_p13, %p1497_p8 }
 0x646   : > { %1507 = shalt.err (!%p1504_p0)
}
 0x647   : > { %s1552_s23 = smov 128   ;;  %s1553_s29 = smov 8  }
 0x648   : > { %1370 = dma.vmem_to_hbm [thread:$0]  (%p1632_p5), %s1825_s21, 256, %s1831_s8, %s1834_s28, %s1552_s23, %s1552_s23, %s1553_s29  }
 0x649 PF: > { %p1376_p1 = scmp.ge.s32.totalorder %s1542_s27, 2  ;;  %s1170_s13 = sand.u32 1, %s1530_s24  }
 0x64a   : > { %s1171_s14 = scalar_lea.sflag [#allocation3], %s1170_s13 }
 0x64b   : > { %p1373_p2 = pnand %p1376_p1, %p1636_p6 }
 0x64d   : > { %1525 = dma.done.wait (!%p1373_p2), %s1171_s14, 256  }
 0x64e   : > { %1527 = vsyncadd (!%p1373_p2), %s1171_s14, 4294967040  ;;  %p17_p3 = scmp.ge.s32.totalorder %s1619_s30, 4   ;;  %s1885_s24 = smov %s1534_s25 }
 0x64f   : > { %s1886_s25 = smov %s1538_s26  ;;  %s1887_s26 = smov %s1630_s10 }
 0x650   : > { %s1888_s27 = smov %s1619_s30  ;;  %19 = sbr.rel (!%p17_p3) target bundleno = 3 (0x3), region = 83 }
 0x657   :  { %1176 = vsyncpa [#allocation3], 1 }
 0x658   :  { %1178 = vsyncpa [#allocation3 + $0x1], 1 }

// kernel: tpu_custom_call.1
= control target key start
LH: loop header
LB: loop body
LE: loop exit
PB: predicated region body
PF: predicated region fallthrough
CT: control target
= control target key end

     0   :  { %12 = vsyncpa [#allocation3], 0  ;;  %s1875_s0 = inlined_call_operand.vmem [shape: bf16[2,18,32], index: 0, kind: input, shape index: {}]   ;;  %s1876_s1 = inlined_call_operand.vmem [shape: bf16[32,128], index: 1, kind: input, shape index: {}]   ;;  %s1877_s2 = inlined_call_operand.vmem [shape: f32[1,128], index: 2, kind: input, shape index: {}]   ;;  %s1878_s3 = inlined_call_operand.vmem [shape: bf16[96,256], index: 3, kind: input, shape index: {}]   ;;  %s1879_s4 = inlined_call_operand.vmem [shape: f32[1,256], index: 4, kind: input, shape index: {}]   ;;  %s1880_s5 = inlined_call_operand.vmem [shape: bf16[128,32], index: 5, kind: input, shape index: {}]   ;;  %s1881_s6 = inlined_call_operand.vmem [shape: f32[1,32], index: 6, kind: input, shape index: {}]   ;;  %s1882_s7 = inlined_call_operand.hbm [shape: f32[2,16,32], index: 7, kind: output, shape index: {}]  }
   0x1   :  { %14 = vsyncpa [#allocation3 + $0x1], 0  ;;  %s1594_s24 = smov 0   ;;  %s1596_s25 = smov 0  }
   0x2   :  { %s1598_s26 = smov 0   ;;  %s1600_s27 = smov 0  }
   0x3 LB: > { %s1615_s28 = sadd.s32 4294967295, %s1542_s27   ;;  %s1217_s29 = sadd.s32 4294967294, %s1542_s27   ;;  %s1542_s27 = sphi %s1600_s27, %s1888_s27   ;;  %s1538_s26 = sphi %s1598_s26, %s1887_s26   ;;  %s1534_s25 = sphi %s1596_s25, %s1886_s25   ;;  %s1530_s24 = sphi %s1594_s24, %s1885_s24  }
   0x4   : > { %s1619_s30 = sadd.s32 1, %s1542_s27   ;;  %s179_s8 = sadd.s32 1, %s1538_s26 }
   0x5   : > { %s176_s9 = ssub.s32 %s1542_s27, %s1619_s30  ;;  %p189_p0 = scmp.ne.s32.totalorder %s1538_s26, %s1534_s25 }
   0x6   : > { %p177_p1 = scmp.eq.s32.totalorder %s176_s9, 0  ;;  %p190_p2 = scmp.eq.s32.totalorder %s1615_s28, 1 }
   0x7   : > { %p195_p3 = scmp.ne.s32.totalorder %s1534_s25, %s1530_s24  ;;  %p196_p4 = scmp.eq.s32.totalorder %s1217_s29, 1 }
   0x8   : > { %s1630_s10 = scalar_select %p177_p1, %s1538_s26, %s179_s8  }
   0x9   : > { %p1632_p5 = por %p190_p2, %p189_p0  ;;  %p1636_p6 = por %p196_p4, %p195_p3 }
   0xa   : > { %p1220_p7 = scmp.ge.s32.totalorder %s1542_s27, 1  ;;  %p240_p8 = scmp.lt.s32.totalorder %s1542_s27, 3 }
   0xc   : > { %p241_p9 = pnand %p1220_p7, %p240_p8 }
   0xd   : > { %p272_p10 = scmp.lt.s32.totalorder (!%p241_p9), %s1615_s28, 1  ;;  %v1420_v0 = vld [vmem:[%s1878_s3 + $0x4] ss:$8 sps:$4 sm:$0xff] (!%p241_p9)   ;;  %v1422_v1 = vld [vmem:[%s1878_s3] ss:$8 sps:$4 sm:$0xff] (!%p241_p9)   ;;  %vm313_vm1 = vcmask (!%p241_p9), 1046528   ;;  %v281_v32 = vlaneseq (!%p241_p9) }
   0xe   : > { %244 = sbr.rel (%p241_p9) target bundleno = 1609 (0x649), region = 48  ;;  %v1423_v2 = vld [vmem:[%s1878_s3 + $0x14] ss:$8 sps:$4 sm:$0xff] (!%p241_p9)   ;;  %412 = vmatprep.subr.bf16.mxu1 (!%p241_p9), %v1420_v0  ;;  %v1425_v3 = vld [vmem:[%s1878_s3 + $0x10] ss:$8 sps:$4 sm:$0xff] (!%p241_p9)   ;;  %v1544_v12 = vmov (!%p241_p9), 0  }
   0xf   : > { %413 = vmatpush1.bf16.msra.mxu1 (!%p241_p9), %v1422_v1  ;;  %v1426_v4 = vld [vmem:[%s1878_s3 + $0x24] ss:$8 sps:$4 sm:$0xff] (!%p241_p9)   ;;  %vm298_vm0 = vsmask.f32 (!%p241_p9), 7424  ;;  %v1428_v7 = vld [vmem:[%s1878_s3 + $0x20] ss:$8 sps:$4 sm:$0xff] (!%p241_p9)   ;;  %444 = vmatprep.mubr.bf16.mxu1 (!%p241_p9), %v1544_v12 }
  0x10   : > { %414 = vmatprep.subr.bf16.mxu1 (!%p241_p9), %v1423_v2  ;;  %v1429_v8 = vld [vmem:[%s1878_s3 + $0x34] ss:$8 sps:$4 sm:$0xff] (!%p241_p9)   ;;  %v1431_v13 = vld [vmem:[%s1878_s3 + $0x30] ss:$8 sps:$4 sm:$0xff] (!%p241_p9)   ;;  %v1432_v14 = vld [vmem:[%s1878_s3 + $0x44] ss:$8 sps:$4 sm:$0xff] (!%p241_p9)  }
  0x11   : > { %v1434_v20 = vld [vmem:[%s1878_s3 + $0x40] ss:$8 sps:$4 sm:$0xff] (!%p241_p9)   ;;  %v1435_v21 = vld [vmem:[%s1878_s3 + $0x54] ss:$8 sps:$4 sm:$0xff] (!%p241_p9)   ;;  %s1545_s9 = smov (!%p241_p9), 32   ;;  %s1546_s15 = smov (!%p241_p9), 64  }
  0x12   : > { %v1437_v24 = vld [vmem:[%s1878_s3 + $0x50] ss:$8 sps:$4 sm:$0xff] (!%p241_p9)   ;;  %vm319_vm2 = vcmask (!%p241_p9), 261120   ;;  %vm322_vm3 = vcmask (!%p241_p9), 523264   ;;  %vm409_vm4 = vcmask (!%p241_p9), 785408   ;;  %v1547_v29 = vmov (!%p241_p9), 0.0  }
  0x13   : > { %415 = vmatpush1.bf16.msra.mxu1 (!%p241_p9), %v1425_v3  ;;  %1293 = vmatprep.subr.bf16.mxu0 (!%p241_p9), %v1547_v29  ;;  %vm1548_vm5 = vmmov (!%p241_p9), 0   ;;  %v1438_v30 = vld [vmem:[%s1876_s1] sm:$0xff] (!%p241_p9)   ;;  %v1439_v31 = vld [vmem:[%s1876_s1 + $0x8] sm:$0xff] (!%p241_p9)   ;;  %v1707_v33 = vshrl.u32 (!%p241_p9), %v281_v32, 7  ;;  %s1549_s22 = smov (!%p241_p9), 96   ;;  %v285_v3 = vand.u32 (!%p241_p9), 127, %v281_v32 }
  0x14   : > { %416 = vmatprep.subr.bf16.mxu1 (!%p241_p9), %v1426_v4  ;;  %1297 = vmatprep.mubr.msk.bf16.mxu0 (!%p241_p9), %vm1548_vm5, %v1547_v29  ;;  %v337_v35 = vld [vmem:[%s1879_s4] sm:$0x3] (!%p241_p9)  ;;  %vm572_vm8 = vcmask (!%p241_p9), 130048   ;;  %s1551_s14 = smov (!%p241_p9), [#allocation2]  }
  0x15   : > { %s273_s17 = scalar_select %p272_p10, %s1615_s28, 1  ;;  %1294 = vmatpush3.bf16.msra.mxu0 %v1438_v30  ;;  %v341_v34 = vsub.s32 0, %v1707_v33  ;;  %v345_v36 = vsub.s32 1, %v1707_v33  ;;  %v1238_v50 = vld [vmem:[%s1877_s2] ss:$0 sm:$0xff]  ;;  %v283_v4 = vadd.s32 8, %v1707_v33  ;;  %vm286_vm6 = vcmp.le.s32.totalorder %v285_v3, %v1707_v33 }
  0x16   : > { %1295 = vmatprep.subr.bf16.mxu0 %v1547_v29  ;;  %s1484_s16 = sshll.u32 %s1551_s14, 4  ;;  %s1485_s16 = int_to_ptr.vmem [resolvable:$false] %s1484_s16 }
  0x17   : > { %s1369_s20 = smul.u32 12, %s273_s17  ;;  %417 = vmatpush1.bf16.msra.mxu1 %v1428_v7  ;;  %v342_v37 = vrot.slane %v337_v35, %v341_v34  ;;  %v346_v39 = vrot.slane %v337_v35, %v345_v36  ;;  %vm287_vm7 = vcmp.le.s32.totalorder %v285_v3, %v283_v4  ;;  %s1486_s17 = scalar_lea.vmem %s1485_s16, 512 }
  0x18   : > { %418 = vmatprep.subr.bf16.mxu1 %v1429_v8 }
  0x19   : > { %s276_s13 = scalar_lea.vmem %s1875_s0, %s1369_s20  ;;  %1296 = vmatpush3.bf16.msra.mxu0 %v1439_v31 }
  0x1a   : > { %v1418_v5 = vld [vmem:[%s276_s13] sm:$0xff]   ;;  %v1419_v6 = vld [vmem:[%s276_s13 + $0x8] ss:$0 sps:$4 sm:$0x11]   ;;  %1313 = vmatprep.subr.bf16.mxu0 %v1547_v29 }
  0x1b   : > { %v300_v9 = vshrl.u32 %v1418_v5, 16  ;;  %v302_v10 = vshll.u32 %v1418_v5, 16  ;;  %v307_v11 = vshll.u32 %v1419_v6, 16  ;;  %v314_v17 = vrot.slane %v1418_v5, 1  ;;  %419 = vmatpush1.bf16.msra.mxu1 %v1431_v13 }
  0x1c   : > { %v315_v18 = vrot.slane %v1419_v6, 1  ;;  %420 = vmatprep.subr.bf16.mxu1 %v1432_v14 }
  0x1d   : > { %v304_v15 = vrot.slane %v302_v10, 1  ;;  %v309_v16 = vrot.slane %v307_v11, 1 }
  0x1e   : > { %v316_v23 = vsel %vm313_vm1, %v314_v17, %v315_v18 }
  0x1f   : > { %v305_v19 = vor.u32 %v304_v15, %v300_v9  ;;  %421 = vmatpush1.bf16.msra.mxu1 %v1434_v20  ;;  %1298 = vmatmul.mubr.msk.bf16.vlgmr.msra.gmra.mrb[0].mxu0 %vm319_vm2, %v316_v23 }
  0x20   : > { %422 = vmatprep.subr.bf16.mxu1 %v1435_v21  ;;  %1315 = vmatprep.mubr.msk.bf16.mxu0 %vm1548_vm5, %v1547_v29 }
  0x21   : > { %v310_v22 = vsel %vm298_vm0, %v305_v19, %v309_v16 }
  0x22   : > { %311 = vrot.lane.b32.xlu0 %v310_v22, %s1545_s9 }
  0x23   : > { %423 = vmatpush1.bf16.msra.mxu1 %v1437_v24 }
  0x24   : > { %1301 = vmatprep.subr.bf16.mxu1 %v1547_v29 }
  0x26   : > { %317 = vrot.lane.b32.xlu0 %v316_v23, %s1546_s15 }
  0x94   : > { %v312_v25 = vpop.permute.xlu0 %311 }
  0x95   : > { %v321_v26 = vsel %vm319_vm2, %v1418_v5, %v312_v25  ;;  %v1550_v5 = vmov -1e+09  }
  0x96   : > { %v288_v6 = vsel %vm286_vm6, 0.0, %v1550_v5  ;;  %v289_v8 = vsel %vm287_vm7, 0.0, %v1550_v5 }
  0x98   : > { %v318_v27 = vpop.permute.xlu0 %317 }
  0x99   : > { %v324_v28 = vsel %vm322_vm3, %v321_v26, %v318_v27 }
  0x9a   : > { %1237 = vmatmul.mubr.msk.bf16.vlgmr.msra.gmra.mrb[0].mxu1 %vm409_vm4, %v324_v28 }
  0x9b   : > { %1303 = vmatprep.mubr.msk.bf16.mxu1 %vm1548_vm5, %v1547_v29 }
  0xf2   : > { %v515_v51 = vpop.f32.mrb[0].mxu0 }
  0xf3   : > { %v516_v52 = vadd.f32 %v1238_v50, %v515_v51  ;;  %v1299_v53 = vpop.f32.mrb[1].mxu0 }
  0xf4   : > { %v518_v54 = vpop.f32.mrb[2].mxu0 }
  0xf5   : > { %v519_v55 = vadd.f32 %v1238_v50, %v518_v54  ;;  %v1300_v56 = vpop.f32.mrb[3].mxu0 }
  0xf7   : > { %v1728_v57 = vpack.c.bf16 %v519_v55, %v516_v52 }
 0x16d   : > { %v446_v38 = vpop.f32.mrb[0].mxu1 }
 0x16e   : > { %v448_v40 = vpop.f32.mrb[1].mxu1  ;;  %v447_v42 = vadd.f32 %v446_v38, %v342_v37 }
 0x16f   : > { %v450_v41 = vpop.f32.mrb[2].mxu1  ;;  %v449_v45 = vadd.f32 %v448_v40, %v346_v39 }
 0x170   : > { %v451_v43 = vadd.f32 %v450_v41, %v342_v37  ;;  %v452_v44 = vpop.f32.mrb[3].mxu1 }
 0x171   : > { %v453_v46 = vadd.f32 %v452_v44, %v346_v39 }
 0x172   : > { %v522_v47 = vpack.c.bf16 %v451_v43, %v447_v42 }
 0x173   : > { %v523_v48 = vpack.c.bf16 %v453_v46, %v449_v45 }
 0x175   : > { %768 = vrot.lane.b32.xlu0 %v523_v48, %s1546_s15  ;;  %645 = vrot.lane.b32.xlu1 %v523_v48, %s1549_s22  ;;  %v529_v49 = vsel %vm319_vm2, %v523_v48, 0 }
 0x176   : > { %1302 = vmatpush3.bf16.xpose.msra.mxu1 %v529_v49 }
 0x177   : > { %1307 = vmatprep.subr.bf16.mxu1 %v1547_v29 }
 0x179   : > { %890 = vrot.lane.b32.xlu0 %v523_v48, %s1545_s9  ;;  %642 = vrot.lane.b32.xlu1 %v522_v47, %s1549_s22 }
 0x17d   : > { %766 = vrot.lane.b32.xlu1 %v522_v47, %s1546_s15  ;;  %1304 = vmatmul.mubr.msk.bf16.vlgmr.msra.gmra.mrb[4].mxu1 %vm319_vm2, %v522_v47 }
 0x17e   : > { %1309 = vmatprep.mubr.msk.bf16.mxu1 %vm1548_vm5, %v1547_v29  ;;  %1308 = vmatpush3.bf16.msra.mxu1 %v1728_v57 }
 0x17f   : > { %1319 = vmatprep.subr.bf16.mxu1 %v1547_v29 }
 0x181   : > { %888 = vrot.lane.b32.xlu1 %v522_v47, %s1545_s9 }
 0x1e7   : > { %v646_v58 = vpop.permute.xlu1 %645  ;;  %v769_v60 = vpop.permute.xlu0 %768 }
 0x1e8   : > { %v651_v59 = vsel %vm319_vm2, %v646_v58, 0  ;;  %v774_v62 = vsel %vm319_vm2, %v769_v60, 0 }
 0x1e9   : > { %1314 = vmatpush3.bf16.xpose.msra.mxu0 %v651_v59 }
 0x1ea   : > { %1325 = vmatprep.subr.bf16.mxu0 %v1547_v29 }
 0x1eb   : > { %v643_v61 = vpop.permute.xlu1 %642  ;;  %v891_v63 = vpop.permute.xlu0 %890 }
 0x1ec   : > { %v896_v1 = vsel %vm319_vm2, %v891_v63, 0 }
 0x1ef   : > { %v767_v0 = vpop.permute.xlu1 %766 }
 0x1f0   : > { %1316 = vmatmul.mubr.msk.bf16.vlgmr.msra.gmra.mrb[4].mxu0 %vm319_vm2, %v643_v61 }
 0x1f1   : > { %1326 = vmatpush3.bf16.xpose.msra.mxu0 %v774_v62  ;;  %1327 = vmatprep.mubr.msk.bf16.mxu0 %vm1548_vm5, %v1547_v29 }
 0x1f2   : > { %1337 = vmatprep.subr.bf16.mxu0 %v1547_v29 }
 0x1f3   : > { %v889_v2 = vpop.permute.xlu1 %888 }
 0x1f8   : > { %1328 = vmatmul.mubr.msk.bf16.vlgmr.msra.gmra.mrb[8].mxu0 %vm319_vm2, %v767_v0 }
 0x1f9   : > { %1338 = vmatpush3.bf16.xpose.msra.mxu0 %v896_v1  ;;  %1339 = vmatprep.mubr.msk.bf16.mxu0 %vm1548_vm5, %v1547_v29 }
 0x1fa   : > { %1349 = vmatprep.subr.bf16.mxu0 %v1547_v29 }
 0x200   : > { %1340 = vmatmul.mubr.msk.bf16.vlgmr.msra.gmra.mrb[12].mxu0 %vm319_vm2, %v889_v2 }
 0x201   : > { %1365 = vmatprep.mubr.msk.bf16.mxu0 %vm1548_vm5, %v1547_v29 }
 0x250   : > { %v565_v7 = vpop.f32.mrb[4].mxu1 }
 0x251   : > { %v566_v9 = vadd.f32 %v565_v7, %v288_v6  ;;  %v1305_v10 = vpop.f32.mrb[5].mxu1 }
 0x252   : > { %v568_v11 = vpop.f32.mrb[6].mxu1 }
 0x253   : > { %v569_v12 = vadd.f32 %v568_v11, %v289_v8  ;;  %v1306_v13 = vpop.f32.mrb[7].mxu1  ;;  %v573_v14 = vsel %vm572_vm8, %v566_v9, -inf }
 0x254   : > { %574 = vmax.xlane.f32.xlu0 %v573_v14 }
 0x255   : > { %v576_v15 = vsel %vm572_vm8, %v569_v12, -inf }
 0x256   : > { %577 = vmax.xlane.f32.xlu1 %v576_v15 }
 0x2c3   : > { %v687_v16 = vpop.f32.mrb[4].mxu0 }
 0x2c4   : > { %v688_v17 = vadd.f32 %v687_v16, %v288_v6  ;;  %v1317_v18 = vpop.f32.mrb[5].mxu0 }
 0x2c5   : > { %v690_v19 = vpop.f32.mrb[6].mxu0 }
 0x2c6   : > { %v691_v20 = vadd.f32 %v690_v19, %v289_v8  ;;  %v1318_v21 = vpop.f32.mrb[7].mxu0  ;;  %v694_v22 = vsel %vm572_vm8, %v688_v17, -inf }
 0x2c7   : > { %695 = vmax.xlane.f32.xlu0 %v694_v22 }
 0x2c8   : > { %v697_v23 = vsel %vm572_vm8, %v691_v20, -inf }
 0x2cb   : > { %v810_v24 = vpop.f32.mrb[8].mxu0  ;;  %698 = vmax.xlane.f32.xlu0 %v697_v23 }
 0x2cc   : > { %v811_v25 = vadd.f32 %v810_v24, %v288_v6  ;;  %v1329_v26 = vpop.f32.mrb[9].mxu0 }
 0x2cd   : > { %v813_v27 = vpop.f32.mrb[10].mxu0 }
 0x2ce   : > { %v814_v28 = vadd.f32 %v813_v27, %v289_v8  ;;  %v1330_v30 = vpop.f32.mrb[11].mxu0  ;;  %v817_v31 = vsel %vm572_vm8, %v811_v25, -inf }
 0x2cf   : > { %818 = vmax.xlane.f32.xlu1 %v817_v31 }
 0x2d0   : > { %v820_v32 = vsel %vm572_vm8, %v814_v28, -inf }
 0x2d1   : > { %821 = vmax.xlane.f32.xlu0 %v820_v32 }
 0x2d3   : > { %v932_v33 = vpop.f32.mrb[12].mxu0 }
 0x2d4   : > { %v933_v34 = vadd.f32 %v932_v33, %v288_v6  ;;  %v1341_v35 = vpop.f32.mrb[13].mxu0 }
 0x2d5   : > { %v935_v36 = vpop.f32.mrb[14].mxu0 }
 0x2d6   : > { %v936_v37 = vadd.f32 %v935_v36, %v289_v8  ;;  %v1342_v38 = vpop.f32.mrb[15].mxu0  ;;  %v939_v39 = vsel %vm572_vm8, %v933_v34, -inf }
 0x2d7   : > { %940 = vmax.xlane.f32.xlu1 %v939_v39 }
 0x2d8   : > { %v942_v40 = vsel %vm572_vm8, %v936_v37, -inf }
 0x2d9   : > { %943 = vmax.xlane.f32.xlu0 %v942_v40 }
 0x2e1   : > { %v575_v41 = vpop.xlane.xlu0 %574 }
 0x2e2   : > { %v579_v42 = vsub.f32 %v566_v9, %v575_v41 }
 0x2e3   : > { %v578_v43 = vpop.xlane.xlu1 %577 }
 0x2e4   : > { %v581_v44 = vmul.f32 1.442695, %v579_v42  ;;  %v580_v45 = vsub.f32 %v569_v12, %v578_v43 }
 0x2e6   : > { %1448 = vpow2.f32 %v581_v44  ;;  %v583_v46 = vmul.f32 1.442695, %v580_v45 }
 0x2e8   : > { %1450 = vpow2.f32 %v583_v46 }
 0x2f0   : > { %v1449_v47 = vpop.eup %1448 }
 0x2f1   : > { %v585_v48 = vsel %vm572_vm8, %v1449_v47, 0.0 }
 0x2f2   : > { %v1451_v49 = vpop.eup %1450  ;;  %586 = vadd.xlane.f32.xlu1 %v585_v48 }
 0x2f3   : > { %v588_v50 = vsel %vm572_vm8, %v1451_v49, 0.0 }
 0x2f4   : > { %589 = vadd.xlane.f32.xlu0 %v588_v50 }
 0x303   : > { %718 = vrot.lane.b32.xlu1 %v1728_v57, %s1549_s22 }
 0x354   : > { %v696_v51 = vpop.xlane.xlu0 %695 }
 0x355   : > { %v700_v52 = vsub.f32 %v688_v17, %v696_v51 }
 0x357   : > { %v702_v53 = vmul.f32 1.442695, %v700_v52 }
 0x358   : > { %v699_v54 = vpop.xlane.xlu0 %698 }
 0x359   : > { %1452 = vpow2.f32 %v702_v53  ;;  %v701_v55 = vsub.f32 %v691_v20, %v699_v54  ;;  %v1440_v54 = vld [vmem:[%s1880_s5] sm:$0xff]  }
 0x35a   : > { %1350 = vmatpush3.bf16.msra.mxu0 %v1440_v54 }
 0x35b   : > { %v704_v56 = vmul.f32 1.442695, %v701_v55  ;;  %v1441_v55 = vld [vmem:[%s1880_s5 + $0x8] sm:$0xff]   ;;  %1351 = vmatprep.subr.bf16.mxu0 %v1547_v29 }
 0x35c   : > { %v819_v58 = vpop.xlane.xlu1 %818 }
 0x35d   : > { %1454 = vpow2.f32 %v704_v56  ;;  %v823_v59 = vsub.f32 %v811_v25, %v819_v58  ;;  %v1442_v56 = vld [vmem:[%s1880_s5 + $0x10] sm:$0xff]   ;;  %v1443_v58 = vld [vmem:[%s1880_s5 + $0x18] sm:$0xff]  }
 0x35e   : > { %v822_v60 = vpop.xlane.xlu0 %821  ;;  %1352 = vmatpush3.bf16.msra.mxu0 %v1441_v55 }
 0x35f   : > { %v825_v61 = vmul.f32 1.442695, %v823_v59  ;;  %v824_v62 = vsub.f32 %v814_v28, %v822_v60  ;;  %1353 = vmatprep.subr.bf16.mxu0 %v1547_v29  ;;  %v1444_v59 = vld [vmem:[%s1880_s5 + $0x20] sm:$0xff]   ;;  %v1445_v60 = vld [vmem:[%s1880_s5 + $0x28] sm:$0xff]  }
 0x361   : > { %1456 = vpow2.f32 %v825_v61  ;;  %v827_v63 = vmul.f32 1.442695, %v824_v62  ;;  %v1446_v62 = vld [vmem:[%s1880_s5 + $0x30] sm:$0xff]  }
 0x362   : > { %1354 = vmatpush3.bf16.msra.mxu0 %v1442_v56 }
 0x363   : > { %v1453_v0 = vpop.eup %1452  ;;  %1458 = vpow2.f32 %v827_v63  ;;  %1355 = vmatprep.subr.bf16.mxu0 %v1547_v29 }
 0x364   : > { %v941_v1 = vpop.xlane.xlu1 %940  ;;  %v706_v2 = vsel %vm572_vm8, %v1453_v0, 0.0 }
 0x365   : > { %v945_v3 = vsub.f32 %v933_v34, %v941_v1  ;;  %707 = vadd.xlane.f32.xlu1 %v706_v2  ;;  %v1447_v1 = vld [vmem:[%s1880_s5 + $0x38] sm:$0xff]  }
 0x366   : > { %v944_v4 = vpop.xlane.xlu0 %943  ;;  %1356 = vmatpush3.bf16.msra.mxu0 %v1443_v58 }
 0x367   : > { %v1455_v5 = vpop.eup %1454  ;;  %v947_v6 = vmul.f32 1.442695, %v945_v3  ;;  %v946_v7 = vsub.f32 %v936_v37, %v944_v4  ;;  %1357 = vmatprep.subr.bf16.mxu0 %v1547_v29 }
 0x368   : > { %v709_v8 = vsel %vm572_vm8, %v1455_v5, 0.0 }
 0x369   : > { %1460 = vpow2.f32 %v947_v6  ;;  %v949_v9 = vmul.f32 1.442695, %v946_v7  ;;  %710 = vadd.xlane.f32.xlu0 %v709_v8 }
 0x36a   : > { %1358 = vmatpush3.bf16.msra.mxu0 %v1444_v59 }
 0x36b   : > { %v1457_v10 = vpop.eup %1456  ;;  %1462 = vpow2.f32 %v949_v9  ;;  %1359 = vmatprep.subr.bf16.mxu0 %v1547_v29 }
 0x36c   : > { %v829_v11 = vsel %vm572_vm8, %v1457_v10, 0.0 }
 0x36d   : > { %v1459_v12 = vpop.eup %1458  ;;  %830 = vadd.xlane.f32.xlu1 %v829_v11 }
 0x36e   : > { %v832_v13 = vsel %vm572_vm8, %v1459_v12, 0.0  ;;  %1360 = vmatpush3.bf16.msra.mxu0 %v1445_v60 }
 0x36f   : > { %833 = vadd.xlane.f32.xlu0 %v832_v13  ;;  %1361 = vmatprep.subr.bf16.mxu0 %v1547_v29 }
 0x372   : > { %1362 = vmatpush3.bf16.msra.mxu0 %v1446_v62 }
 0x373   : > { %v1461_v14 = vpop.eup %1460  ;;  %1363 = vmatprep.subr.bf16.mxu0 %v1547_v29 }
 0x374   : > { %v951_v15 = vsel %vm572_vm8, %v1461_v14, 0.0 }
 0x375   : > { %v1463_v16 = vpop.eup %1462  ;;  %952 = vadd.xlane.f32.xlu1 %v951_v15 }
 0x376   : > { %v954_v17 = vsel %vm572_vm8, %v1463_v16, 0.0  ;;  %1364 = vmatpush3.bf16.msra.mxu0 %v1447_v1 }
 0x377   : > { %955 = vadd.xlane.f32.xlu0 %v954_v17 }
 0x37f   : > { %v587_v18 = vpop.xlane.xlu1 %586 }
 0x380   : > { %1464 = vrcp.f32 %v587_v18 }
 0x381   : > { %v590_v19 = vpop.xlane.xlu0 %589 }
 0x382   : > { %1466 = vrcp.f32 %v590_v19  ;;  %v1250_v19 = vld [vmem:[%s1881_s6] ss:$0 sm:$0xff] }
 0x383   : > { %v719_v25 = vpop.permute.xlu1 %718 }
 0x386   : > { %962 = vrot.lane.b32.xlu1 %v1728_v57, %s1545_s9 }
 0x38a   : > { %v1465_v20 = vpop.eup %1464 }
 0x38b   : > { %v593_v22 = vmul.f32 %v1465_v20, %v1449_v47 }
 0x38c   : > { %v1467_v21 = vpop.eup %1466 }
 0x38d   : > { %v594_v23 = vmul.f32 %v1467_v21, %v1451_v49  ;;  %840 = vrot.lane.b32.xlu0 %v1728_v57, %s1546_s15 }
 0x38f   : > { %v595_v24 = vpack.c.bf16 %v594_v23, %v593_v22 }
 0x391   : > { %1310 = vmatmul.mubr.msk.bf16.vlgmr.msra.gmra.mrb[8].mxu1 %vm572_vm8, %v595_v24 }
 0x392   : > { %1320 = vmatpush3.bf16.msra.mxu1 %v719_v25  ;;  %1321 = vmatprep.mubr.msk.bf16.mxu1 %vm1548_vm5, %v1547_v29 }
 0x393   : > { %1331 = vmatprep.subr.bf16.mxu1 %v1547_v29 }
 0x3f2   : > { %v708_v26 = vpop.xlane.xlu1 %707 }
 0x3f3   : > { %1468 = vrcp.f32 %v708_v26 }
 0x3f6   : > { %v711_v27 = vpop.xlane.xlu0 %710 }
 0x3f7   : > { %1470 = vrcp.f32 %v711_v27 }
 0x3fa   : > { %v831_v28 = vpop.xlane.xlu1 %830 }
 0x3fb   : > { %1472 = vrcp.f32 %v831_v28 }
 0x3fc   : > { %v834_v30 = vpop.xlane.xlu0 %833 }
 0x3fd   : > { %1474 = vrcp.f32 %v834_v30  ;;  %v1469_v31 = vpop.eup %1468 }
 0x3fe   : > { %v714_v32 = vmul.f32 %v1469_v31, %v1453_v0 }
 0x401   : > { %v1471_v57 = vpop.eup %1470 }
 0x402   : > { %v715_v33 = vmul.f32 %v1471_v57, %v1455_v5  ;;  %v953_v34 = vpop.xlane.xlu1 %952 }
 0x403   : > { %1476 = vrcp.f32 %v953_v34 }
 0x404   : > { %v956_v35 = vpop.xlane.xlu0 %955  ;;  %v716_v36 = vpack.c.bf16 %v715_v33, %v714_v32 }
 0x405   : > { %1478 = vrcp.f32 %v956_v35  ;;  %v1473_v37 = vpop.eup %1472 }
 0x406   : > { %1322 = vmatmul.mubr.msk.bf16.vlgmr.msra.gmra.mrb[12].mxu1 %vm572_vm8, %v716_v36  ;;  %v837_v41 = vmul.f32 %v1473_v37, %v1457_v10  ;;  %v963_v44 = vpop.permute.xlu1 %962 }
 0x407   : > { %v1475_v38 = vpop.eup %1474  ;;  %1333 = vmatprep.mubr.msk.bf16.mxu1 %vm1548_vm5, %v1547_v29 }
 0x408   : > { %v838_v39 = vmul.f32 %v1475_v38, %v1459_v12  ;;  %v841_v40 = vpop.permute.xlu0 %840 }
 0x409   : > { %1332 = vmatpush3.bf16.msra.mxu1 %v841_v40 }
 0x40a   : > { %1343 = vmatprep.subr.bf16.mxu1 %v1547_v29  ;;  %v839_v42 = vpack.c.bf16 %v838_v39, %v837_v41 }
 0x40d   : > { %v1477_v43 = vpop.eup %1476 }
 0x40e   : > { %1334 = vmatmul.mubr.msk.bf16.vlgmr.msra.gmra.mrb[16].mxu1 %vm572_vm8, %v839_v42  ;;  %v959_v47 = vmul.f32 %v1477_v43, %v1461_v14 }
 0x40f   : > { %v1479_v45 = vpop.eup %1478  ;;  %1344 = vmatpush3.bf16.msra.mxu1 %v963_v44  ;;  %1345 = vmatprep.mubr.msk.bf16.mxu1 %vm1548_vm5, %v1547_v29 }
 0x410   : > { %v960_v46 = vmul.f32 %v1479_v45, %v1463_v16 }
 0x412   : > { %v961_v48 = vpack.c.bf16 %v960_v46, %v959_v47 }
 0x416   : > { %1346 = vmatmul.mubr.msk.bf16.vlgmr.msra.gmra.mrb[20].mxu1 %vm572_vm8, %v961_v48 }
 0x464   : > { %v633_v49 = vpop.f32.mrb[8].mxu1 }
 0x465   : > { %v1311_v50 = vpop.f32.mrb[9].mxu1 }
 0x466   : > { %v636_v51 = vpop.f32.mrb[10].mxu1 }
 0x467   : > { %v640_v52 = vpack.c.bf16 %v636_v51, %v633_v49  ;;  %v1312_v53 = vpop.f32.mrb[11].mxu1 }
 0x4d9   : > { %v758_v61 = vpop.f32.mrb[12].mxu1 }
 0x4da   : > { %v1323_v63 = vpop.f32.mrb[13].mxu1 }
 0x4db   : > { %v761_v0 = vpop.f32.mrb[14].mxu1 }
 0x4dc   : > { %v765_v2 = vpack.c.bf16 %v761_v0, %v758_v61  ;;  %v1324_v3 = vpop.f32.mrb[15].mxu1 }
 0x4de   : > { %1011 = vrot.lane.b32.xlu1 %v765_v2, %s1545_s9  ;;  %s269_s9 = sand.u32 1, %s1534_s25  }
 0x4e1   : > { %v880_v4 = vpop.f32.mrb[16].mxu1 }
 0x4e2   : > { %v1335_v5 = vpop.f32.mrb[17].mxu1 }
 0x4e3   : > { %v883_v6 = vpop.f32.mrb[18].mxu1 }
 0x4e4   : > { %v887_v7 = vpack.c.bf16 %v883_v6, %v880_v4  ;;  %v1336_v8 = vpop.f32.mrb[19].mxu1 }
 0x4e6   : > { %1014 = vrot.lane.b32.xlu0 %v887_v7, %s1546_s15  ;;  %s1221_s15 = sshll.u32 %s269_s9, 4 }
 0x4e7   : > { %s271_s20 = scalar_lea.vmem [#allocation2], %s1221_s15 }
 0x4e8   : > { %s1155_s21 = sshll.u32 %s271_s20, 4  ;;  %s1825_s21 = int_to_ptr.vmem [resolvable:$true] %s1155_s21 }
 0x4e9   : > { %v1002_v9 = vpop.f32.mrb[20].mxu1  ;;  %s1480_s13 = scalar_lea.vmem %s1825_s21, 256  ;;  %p1487_p0 = scmp.lt.s32.totalorder %s1825_s21, %s1485_s16 }
 0x4ea   : > { %v1347_v10 = vpop.f32.mrb[21].mxu1  ;;  %p1481_p11 = scmp.ne.s32.totalorder %s1825_s21, %s1480_s13  ;;  %p1488_p1 = scmp.lt.s32.totalorder %s1486_s17, %s1480_s13 }
 0x4eb   : > { %v1005_v11 = vpop.f32.mrb[22].mxu1 }
 0x4ec   : > { %v1009_v12 = vpack.c.bf16 %v1005_v11, %v1002_v9  ;;  %v1348_v13 = vpop.f32.mrb[23].mxu1  ;;  %p1482_p12 = pnand %p1481_p11, %p1632_p5  ;;  %p1489_p2 = por %p1488_p1, %p1487_p0 }
 0x4ee   : > { %1017 = vrot.lane.b32.xlu1 %v1009_v12, %s1549_s22  ;;  %s1264_s22 = sshll.u32 %s1615_s28, 8  ;;  %s1834_s28 = scalar_lea.sflag [#allocation3], %s269_s9 }
 0x4ef   : > { %s1831_s8 = scalar_lea.hbm %s1882_s7, %s1264_s22  ;;  %p1483_p13 = pneg %p1482_p12 }
 0x4f1   : > { %p1490_p3 = pnand %p1489_p2, %p1483_p13 }
 0x550   : > { %v1012_v29 = vpop.permute.xlu1 %1011 }
 0x551   : > { %v1021_v15 = vsel %vm319_vm2, %v640_v52, %v1012_v29 }
 0x558   : > { %v1015_v14 = vpop.permute.xlu0 %1014 }
 0x559   : > { %v1023_v16 = vsel %vm322_vm3, %v1021_v15, %v1015_v14 }
 0x560   : > { %v1018_v17 = vpop.permute.xlu1 %1017 }
 0x561   : > { %v1025_v18 = vsel %vm409_vm4, %v1023_v16, %v1018_v17 }
 0x562   : > { %1366 = vmatmul.mubr.bf16.vlgmr.msra.gmra.mrb[16].mxu0 %v1025_v18 }
 0x635   : > { %v1132_v20 = vpop.f32.mrb[16].mxu0 }
 0x636   : > { %v1133_v21 = vadd.f32 %v1250_v19, %v1132_v20  ;;  %v1367_v22 = vpop.f32.mrb[17].mxu0 }
 0x637   : > { %v1135_v23 = vpop.f32.mrb[18].mxu0 }
 0x638   : > { %1139 = vst.msk [vmem:[%s271_s20] sm:$0xff] %vm319_vm2, %v1133_v21  ;;  %v1136_v24 = vadd.f32 %v1250_v19, %v1135_v23  ;;  %v1368_v25 = vpop.f32.mrb[19].mxu0 }
 0x63a   : > { %1140 = vst.msk [vmem:[%s271_s20 + $0x8] sm:$0xff] %vm319_vm2, %v1136_v24 }
 0x63b   : > { %1493 = shalt.err (!%p1490_p3)
}
 0x63c   : > { %s1494_s9 = scalar_lea.hbm %s1831_s8, 256  ;;  %s1498_s19 = scalar_lea.hbm %s1882_s7, 512 }
 0x63d   : > { %p1495_p4 = scmp.ne.s32.totalorder %s1831_s8, %s1494_s9  ;;  %p1499_p9 = scmp.lt.u32.totalorder %s1831_s8, %s1882_s7 }
 0x63e   : > { %p1500_p10 = scmp.lt.u32.totalorder %s1498_s19, %s1494_s9  ;;  %p1502_p12 = scmp.lt.u32.totalorder %s1494_s9, %s1831_s8 }
 0x63f   : > { %p1496_p7 = pnand %p1495_p4, %p1632_p5 }
 0x640   : > { %p1501_p11 = por %p1500_p10, %p1499_p9 }
 0x641   : > { %p1497_p8 = pneg %p1496_p7 }
 0x642   : > { %p1503_p13 = por %p1502_p12, %p1501_p11 }
 0x644   : > { %p1504_p0 = pnand %p1503_p13, %p1497_p8 }
 0x646   : > { %1507 = shalt.err (!%p1504_p0)
}
 0x647   : > { %s1552_s23 = smov 128   ;;  %s1553_s29 = smov 8  }
 0x648   : > { %1370 = dma.vmem_to_hbm [thread:$0]  (%p1632_p5), %s1825_s21, 256, %s1831_s8, %s1834_s28, %s1552_s23, %s1552_s23, %s1553_s29  }
 0x649 PF: > { %p1376_p1 = scmp.ge.s32.totalorder %s1542_s27, 2  ;;  %s1170_s13 = sand.u32 1, %s1530_s24  }
 0x64a   : > { %s1171_s14 = scalar_lea.sflag [#allocation3], %s1170_s13 }
 0x64b   : > { %p1373_p2 = pnand %p1376_p1, %p1636_p6 }
 0x64d   : > { %1525 = dma.done.wait (!%p1373_p2), %s1171_s14, 256  }
 0x64e   : > { %1527 = vsyncadd (!%p1373_p2), %s1171_s14, 4294967040  ;;  %p17_p3 = scmp.ge.s32.totalorder %s1619_s30, 4   ;;  %s1885_s24 = smov %s1534_s25 }
 0x64f   : > { %s1886_s25 = smov %s1538_s26  ;;  %s1887_s26 = smov %s1630_s10 }
 0x650   : > { %s1888_s27 = smov %s1619_s30  ;;  %19 = sbr.rel (!%p17_p3) target bundleno = 3 (0x3), region = 83 }
 0x657   :  { %1176 = vsyncpa [#allocation3], 1 }
 0x658   :  { %1178 = vsyncpa [#allocation3 + $0x1], 1 }

</bundles_post_ra>
